<compile_context>
chip_gen: v6e
topology: v6e:2x2x1
jax: 0.10.0
libtpu: 0.0.40
codegen_flags: <defaults>
</compile_context>

<pallas_src>
import functools

import jax
import jax.numpy as jnp
from jax.experimental import pallas as pl
from jax.experimental.pallas import tpu as pltpu

INPUT_SIZE = 784      # K
HIDDEN_SIZE = 100     # logical hidden width
NUM_CLASSES = 10      # logical output width

H_PAD = 128           # hidden padded to lane width (128)
C_PAD = 128           # classes padded to lane width -> unmasked stores
TILE_B = 256          # MXU-sized batch tile (256 for v6e/v7x; 128 on v5e)


def mlp_kernel(x_ref, w1_ref, b1_ref, w2_ref, b2_ref, o_ref):
    # x: (TILE_B, 784) bf16, w1: (784, 128) bf16 -> f32 accumulation on the MXU.
    h = jnp.dot(x_ref[...], w1_ref[...], preferred_element_type=jnp.float32)
    h = jnp.maximum(h + b1_ref[...], 0.0)              # bias + ReLU in f32 (VPU)
    out = jnp.dot(h.astype(jnp.bfloat16), w2_ref[...],
                  preferred_element_type=jnp.float32)  # (TILE_B, 128) f32
    o_ref[...] = (out + b2_ref[...]).astype(o_ref.dtype)


def prepare_params(w1, b1, w2, b2):
    """Pad narrow dims to lane width and cast matmul weights to bf16 — ONCE.

    Zero padding is exact: padded hidden lanes are ReLU(0 + 0) = 0 and the
    corresponding w2 rows are zero, so they contribute nothing; padded output
    lanes are sliced off in the wrapper.
    """
    w1p = jnp.pad(w1, ((0, 0), (0, H_PAD - HIDDEN_SIZE))).astype(jnp.bfloat16)
    b1p = jnp.pad(b1, ((0, 0), (0, H_PAD - HIDDEN_SIZE))).astype(jnp.float32)
    w2p = jnp.pad(w2, ((0, H_PAD - HIDDEN_SIZE),
                       (0, C_PAD - NUM_CLASSES))).astype(jnp.bfloat16)
    b2p = jnp.pad(b2, ((0, 0), (0, C_PAD - NUM_CLASSES))).astype(jnp.float32)
    return w1p, b1p, w2p, b2p


@jax.jit
def neural_net_forward(x, w1p, b1p, w2p, b2p):
    """x: (B, 784) f32 -> logits (B, 10) f32."""
    B = x.shape[0]
    n_tiles = pl.cdiv(B, TILE_B)
    b_pad = n_tiles * TILE_B
    if b_pad != B:                      # pad batch up to a whole number of tiles
        x = jnp.pad(x, ((0, b_pad - B), (0, 0)))
    x_bf = x.astype(jnp.bfloat16)

    flops = 2 * b_pad * (INPUT_SIZE * H_PAD + H_PAD * C_PAD)
    bytes_accessed = (x_bf.size * 2 + w1p.size * 2 + w2p.size * 2
                      + b1p.size * 4 + b2p.size * 4 + b_pad * C_PAD * 4)

    out = pl.pallas_call(
        mlp_kernel,
        out_shape=jax.ShapeDtypeStruct((b_pad, C_PAD), jnp.float32),
        grid_spec=pltpu.PrefetchScalarGridSpec(
            num_scalar_prefetch=0,
            grid=(n_tiles,),
            in_specs=[
                pl.BlockSpec((TILE_B, INPUT_SIZE), lambda i: (i, 0)),   # x tile
                pl.BlockSpec((INPUT_SIZE, H_PAD), lambda i: (0, 0)),    # w1 resident
                pl.BlockSpec((1, H_PAD), lambda i: (0, 0)),             # b1 resident
                pl.BlockSpec((H_PAD, C_PAD), lambda i: (0, 0)),         # w2 resident
                pl.BlockSpec((1, C_PAD), lambda i: (0, 0)),             # b2 resident
            ],
            out_specs=pl.BlockSpec((TILE_B, C_PAD), lambda i: (i, 0)),  # lane-dense
        ),
        compiler_params=pltpu.CompilerParams(
            dimension_semantics=("parallel",),   # megacore sharding on v7x
            vmem_limit_bytes=32 << 20,
        ),
        cost_estimate=pl.CostEstimate(
            flops=flops, transcendentals=0, bytes_accessed=bytes_accessed),
    )(x_bf, w1p, b1p, w2p, b2p)

    return out[:B, :NUM_CLASSES]


def init_params(key):
    """Deterministic init mimicking nn.Linear's U(-1/sqrt(fan_in), 1/sqrt(fan_in))."""
    k1, k2, k3, k4 = jax.random.split(key, 4)
    bound1 = 1.0 / (INPUT_SIZE ** 0.5)
    bound2 = 1.0 / (HIDDEN_SIZE ** 0.5)
    w1 = jax.random.uniform(k1, (INPUT_SIZE, HIDDEN_SIZE), jnp.float32,
                            -bound1, bound1)
    b1 = jax.random.uniform(k2, (1, HIDDEN_SIZE), jnp.float32, -bound1, bound1)
    w2 = jax.random.uniform(k3, (HIDDEN_SIZE, NUM_CLASSES), jnp.float32,
                            -bound2, bound2)
    b2 = jax.random.uniform(k4, (1, NUM_CLASSES), jnp.float32, -bound2, bound2)
    return w1, b1, w2, b2


if __name__ == "__main__":
    key = jax.random.PRNGKey(0)
    kx, kp = jax.random.split(key)

    # Not a multiple of TILE_B: exercises batch padding and a 2-step grid.
    batch = 300
    x = jax.random.normal(kx, (batch, INPUT_SIZE), jnp.float32)
    w1, b1, w2, b2 = init_params(kp)
    w1p, b1p, w2p, b2p = prepare_params(w1, b1, w2, b2)

    logits = neural_net_forward(x, w1p, b1p, w2p, b2p)
    logits = jax.block_until_ready(logits)

    # Plain-JAX reference with the same bf16 weights / f32 accumulation.
    xb = x.astype(jnp.bfloat16)
    h_ref = jnp.maximum(
        jnp.dot(xb, w1.astype(jnp.bfloat16),
                preferred_element_type=jnp.float32) + b1, 0.0)
    ref = jnp.dot(h_ref.astype(jnp.bfloat16), w2.astype(jnp.bfloat16),
                  preferred_element_type=jnp.float32) + b2

    assert logits.shape == (batch, NUM_CLASSES)
    assert jnp.allclose(logits, ref, atol=2e-2, rtol=2e-2), \
        float(jnp.max(jnp.abs(logits - ref)))

    print("KERNEL_OK")
</pallas_src>

<mosaic_0001>
module attributes {stable_mosaic.version = 11 : i64} {
  func.func @mlp_kernel(%arg0: i32, %arg1: memref<256x784xbf16, #tpu.memory_space<vmem>>, %arg2: memref<784x128xbf16, #tpu.memory_space<vmem>>, %arg3: memref<1x128xf32, #tpu.memory_space<vmem>>, %arg4: memref<128x128xbf16, #tpu.memory_space<vmem>>, %arg5: memref<1x128xf32, #tpu.memory_space<vmem>>, %arg6: memref<256x128xf32, #tpu.memory_space<vmem>>) attributes {dimension_semantics = [#tpu.dimension_semantics<parallel>], iteration_bounds = array<i64: 2>, scalar_prefetch = 0 : i64, scratch_operands = 0 : i64, tpu.core_type = #tpu.core_type<tc>, window_params = [{transform_indices = @transform_0, window_bounds = array<i64: 256, 784>}, {pipeline_mode = #tpu.pipeline_mode<synchronous>, transform_indices = @transform_1, window_bounds = array<i64: 784, 128>}, {pipeline_mode = #tpu.pipeline_mode<synchronous>, transform_indices = @transform_2, window_bounds = array<i64: 1, 128>}, {pipeline_mode = #tpu.pipeline_mode<synchronous>, transform_indices = @transform_3, window_bounds = array<i64: 128, 128>}, {pipeline_mode = #tpu.pipeline_mode<synchronous>, transform_indices = @transform_4, window_bounds = array<i64: 1, 128>}, {transform_indices = @transform_5, window_bounds = array<i64: 256, 128>}]} {
    %c0 = arith.constant 0 : index
    %c0_0 = arith.constant 0 : index
    %0 = vector.load %arg1[%c0, %c0_0] : memref<256x784xbf16, #tpu.memory_space<vmem>>, vector<256x784xbf16>
    %c0_1 = arith.constant 0 : index
    %c0_2 = arith.constant 0 : index
    %1 = vector.load %arg2[%c0_1, %c0_2] : memref<784x128xbf16, #tpu.memory_space<vmem>>, vector<784x128xbf16>
    %cst = arith.constant dense<0.000000e+00> : vector<256x128xf32>
    %2 = tpu.matmul %0, %1, %cst {dimension_numbers = #tpu.dot_dimension_numbers<[1], [0], [0], [1], [0, 0, 1, 1], [], []>} : vector<256x784xbf16>, vector<784x128xbf16>, vector<256x128xf32> -> vector<256x128xf32>
    %c0_3 = arith.constant 0 : index
    %c0_4 = arith.constant 0 : index
    %3 = vector.load %arg3[%c0_3, %c0_4] : memref<1x128xf32, #tpu.memory_space<vmem>>, vector<1x128xf32>
    %4 = vector.broadcast %3 : vector<1x128xf32> to vector<256x128xf32>
    %5 = arith.addf %2, %4 : vector<256x128xf32>
    %cst_5 = arith.constant 0.000000e+00 : f32
    %6 = vector.broadcast %cst_5 : f32 to vector<256x128xf32>
    %7 = arith.maximumf %5, %6 : vector<256x128xf32>
    %8 = arith.truncf %7 : vector<256x128xf32> to vector<256x128xbf16>
    %c0_6 = arith.constant 0 : index
    %c0_7 = arith.constant 0 : index
    %9 = vector.load %arg4[%c0_6, %c0_7] : memref<128x128xbf16, #tpu.memory_space<vmem>>, vector<128x128xbf16>
    %cst_8 = arith.constant dense<0.000000e+00> : vector<256x128xf32>
    %10 = tpu.matmul %8, %9, %cst_8 {dimension_numbers = #tpu.dot_dimension_numbers<[1], [0], [0], [1], [0, 0, 1, 1], [], []>} : vector<256x128xbf16>, vector<128x128xbf16>, vector<256x128xf32> -> vector<256x128xf32>
    %c0_9 = arith.constant 0 : index
    %c0_10 = arith.constant 0 : index
    %11 = vector.load %arg5[%c0_9, %c0_10] : memref<1x128xf32, #tpu.memory_space<vmem>>, vector<1x128xf32>
    %12 = vector.broadcast %11 : vector<1x128xf32> to vector<256x128xf32>
    %13 = arith.addf %10, %12 : vector<256x128xf32>
    %c0_11 = arith.constant 0 : index
    %c0_12 = arith.constant 0 : index
    %14 = vector.load %arg6[%c0_11, %c0_12] : memref<256x128xf32, #tpu.memory_space<vmem>>, vector<256x128xf32>
    tpu.vector_store %arg6[%c0_11, %c0_12], %13 {strides = array<i32>} : memref<256x128xf32, #tpu.memory_space<vmem>>, vector<256x128xf32>,
    return
  }
  func.func @transform_0(%arg0: i32) -> (i32, i32) {
    %c0_i32 = arith.constant 0 : i32
    %c0_i32_0 = arith.constant 0 : i32
    return %arg0, %c0_i32 : i32, i32
  }
  func.func @transform_1(%arg0: i32) -> (i32, i32) {
    %c0_i32 = arith.constant 0 : i32
    %c0_i32_0 = arith.constant 0 : i32
    %c0_i32_1 = arith.constant 0 : i32
    return %c0_i32, %c0_i32_0 : i32, i32
  }
  func.func @transform_2(%arg0: i32) -> (i32, i32) {
    %c0_i32 = arith.constant 0 : i32
    %c0_i32_0 = arith.constant 0 : i32
    %c0_i32_1 = arith.constant 0 : i32
    return %c0_i32, %c0_i32_0 : i32, i32
  }
  func.func @transform_3(%arg0: i32) -> (i32, i32) {
    %c0_i32 = arith.constant 0 : i32
    %c0_i32_0 = arith.constant 0 : i32
    %c0_i32_1 = arith.constant 0 : i32
    return %c0_i32, %c0_i32_0 : i32, i32
  }
  func.func @transform_4(%arg0: i32) -> (i32, i32) {
    %c0_i32 = arith.constant 0 : i32
    %c0_i32_0 = arith.constant 0 : i32
    %c0_i32_1 = arith.constant 0 : i32
    return %c0_i32, %c0_i32_0 : i32, i32
  }
  func.func @transform_5(%arg0: i32) -> (i32, i32) {
    %c0_i32 = arith.constant 0 : i32
    %c0_i32_0 = arith.constant 0 : i32
    return %arg0, %c0_i32 : i32, i32
  }
}

</mosaic_0001>

<bundles_post_ra>
// kernel: neural_net_forward.1
= control target key start
LH: loop header
LB: loop body
LE: loop exit
PB: predicated region body
PF: predicated region fallthrough
CT: control target
= control target key end

     0   :  { %s3301_s18 = smov 0   ;;  %s3829_s0 = inlined_call_operand.vmem [shape: bf16[512,784], index: 0, kind: input, shape index: {}]   ;;  %s3830_s1 = inlined_call_operand.vmem [shape: bf16[784,128], index: 1, kind: input, shape index: {}]   ;;  %s3831_s2 = inlined_call_operand.vmem [shape: f32[1,128], index: 2, kind: input, shape index: {}]   ;;  %s3832_s3 = inlined_call_operand.vmem [shape: bf16[128,128], index: 3, kind: input, shape index: {}]   ;;  %s3833_s4 = inlined_call_operand.vmem [shape: f32[1,128], index: 4, kind: input, shape index: {}]   ;;  %s3834_s5 = inlined_call_operand.vmem [shape: f32[512,128], index: 5, kind: output, shape index: {}]  }
   0x1 LB: > { %s2380_s19 = sadd.s32 4294967295, %s3269_s18   ;;  %p2384_p0 = scmp.ge.s32.totalorder %s3269_s18, 1  ;;  %s3269_s18 = sphi %s3301_s18, %s15_s18  }
   0x2   : > { %p189_p1 = scmp.lt.s32.totalorder %s3269_s18, 3 }
   0x4   : > { %p190_p2 = pnand %p2384_p0, %p189_p1 }
   0x5   : > { %s2385_s25 = sshll.u32 (!%p190_p2), %s2380_s19, 5 }
   0x6   : > { %193 = sbr.rel (%p190_p2) target bundleno = 703 (0x2bf), region = 40  ;;  %p219_p3 = scmp.lt.s32.totalorder (!%p190_p2), %s2385_s25, 63 }
   0xb   : > { %v3046_v0 = vld [vmem:[%s3830_s1 + $0x78] sm:$0xff]   ;;  %v3050_v4 = vld [vmem:[%s3830_s1 + $0x70] sm:$0xff]   ;;  %v3054_v8 = vld [vmem:[%s3830_s1 + $0x68] sm:$0xff]   ;;  %s3836_s25 = smov (!%p219_p3, %s2385_s25), 63  ;;  %vm1319_vm0 = vcmask 130048  }
   0xc   : > { %v3047_v1 = vld [vmem:[%s3830_s1 + $0x38] sm:$0xff]   ;;  %2578 = vmatprep.subr.bf16.mxu0 %v3046_v0  ;;  %v3051_v5 = vld [vmem:[%s3830_s1 + $0x30] sm:$0xff]   ;;  %v3055_v9 = vld [vmem:[%s3830_s1 + $0x28] sm:$0xff]   ;;  %s3037_s24 = smul.u32 28, %s3836_s25 }
   0xd   : > { %v3048_v2 = vld [vmem:[%s3830_s1 + $0xf8] sm:$0xff]   ;;  %2579 = vmatpush3.bf16.msra.mxu0 %v3047_v1  ;;  %v3052_v6 = vld [vmem:[%s3830_s1 + $0xf0] sm:$0xff]   ;;  %v3056_v10 = vld [vmem:[%s3830_s1 + $0xe8] sm:$0xff]  }
   0xe   : > { %v3049_v3 = vld [vmem:[%s3830_s1 + $0xb8] sm:$0xff]   ;;  %2690 = vmatprep.subr.bf16.mxu1 %v3048_v2  ;;  %2580 = vmatprep.subr.bf16.mxu0 %v3050_v4  ;;  %v3053_v7 = vld [vmem:[%s3830_s1 + $0xb0] sm:$0xff]   ;;  %v3057_v11 = vld [vmem:[%s3830_s1 + $0xa8] sm:$0xff]   ;;  %s3404_s10 = scalar_lea.vmem %s3829_s0, %s3037_s24 }
   0xf   : > { %2691 = vmatpush3.bf16.msra.mxu1 %v3049_v3  ;;  %v3058_v12 = vld [vmem:[%s3830_s1 + $0x60] sm:$0xff]   ;;  %v3062_v16 = vld [vmem:[%s3830_s1 + $0x58] sm:$0xff]   ;;  %v3066_v20 = vld [vmem:[%s3830_s1 + $0x50] sm:$0xff]  }
  0x10   : > { %2692 = vmatprep.subr.bf16.mxu1 %v3052_v6  ;;  %v3059_v13 = vld [vmem:[%s3830_s1 + $0x20] sm:$0xff]   ;;  %v3063_v17 = vld [vmem:[%s3830_s1 + $0x18] sm:$0xff]   ;;  %v3067_v21 = vld [vmem:[%s3830_s1 + $0x10] sm:$0xff]  }
  0x11   : > { %2581 = vmatpush3.bf16.msra.mxu0 %v3051_v5  ;;  %v3060_v14 = vld [vmem:[%s3830_s1 + $0xe0] sm:$0xff]   ;;  %v3064_v18 = vld [vmem:[%s3830_s1 + $0xd8] sm:$0xff]   ;;  %v3068_v22 = vld [vmem:[%s3830_s1 + $0xd0] sm:$0xff]  }
  0x12   : > { %2582 = vmatprep.subr.bf16.mxu0 %v3054_v8  ;;  %v3061_v15 = vld [vmem:[%s3830_s1 + $0xa0] sm:$0xff]   ;;  %v3065_v19 = vld [vmem:[%s3830_s1 + $0x98] sm:$0xff]   ;;  %v3069_v23 = vld [vmem:[%s3830_s1 + $0x90] sm:$0xff]  }
  0x13   : > { %2693 = vmatpush3.bf16.msra.mxu1 %v3053_v7  ;;  %v3070_v24 = vld [vmem:[%s3830_s1 + $0x48] sm:$0xff]   ;;  %v3074_v28 = vld [vmem:[%s3830_s1 + $0x40] sm:$0xff]   ;;  %v3081_v34 = vld [vmem:[%s3830_s1 + $0x178] sm:$0xff]  }
  0x14   : > { %2694 = vmatprep.subr.bf16.mxu1 %v3056_v10  ;;  %v3071_v25 = vld [vmem:[%s3830_s1 + $0x8] sm:$0xff]   ;;  %v3075_v29 = vld [vmem:[%s3830_s1] sm:$0xff]   ;;  %v3085_v37 = vld [vmem:[%s3830_s1 + $0x138] sm:$0xff]  }
  0x15   : > { %2583 = vmatpush3.bf16.msra.mxu0 %v3055_v9  ;;  %v3072_v26 = vld [vmem:[%s3830_s1 + $0xc8] sm:$0xff]   ;;  %v3076_v30 = vld [vmem:[%s3830_s1 + $0xc0] sm:$0xff]   ;;  %v3086_v38 = vld [vmem:[%s3404_s10 + $0x3c] ss:$28 sps:$4 sm:$0xff]  }
  0x16   : > { %2584 = vmatprep.subr.bf16.mxu0 %v3058_v12  ;;  %v3073_v27 = vld [vmem:[%s3830_s1 + $0x88] sm:$0xff]   ;;  %v3077_v31 = vld [vmem:[%s3404_s10] ss:$28 sps:$4 sm:$0xff]   ;;  %v3088_v40 = vld [vmem:[%s3404_s10 + $0x38] ss:$28 sps:$4 sm:$0xff]  }
  0x17   : > { %2695 = vmatpush3.bf16.msra.mxu1 %v3057_v11  ;;  %v3079_v32 = vld [vmem:[%s3404_s10 + $0x4] ss:$28 sps:$4 sm:$0xff]   ;;  %v3084_v36 = vld [vmem:[%s3404_s10 + $0xc] ss:$28 sps:$4 sm:$0xff]   ;;  %v3092_v41 = vld [vmem:[%s3404_s10 + $0x74] ss:$28 sps:$4 sm:$0xff]  }
  0x18   : > { %2696 = vmatprep.subr.bf16.mxu1 %v3060_v14  ;;  %v3080_v33 = vld [vmem:[%s3830_s1 + $0x80] sm:$0xff]   ;;  %1400 = vmatprep.mubr.bf16.mxu0 %v3079_v32  ;;  %v3095_v42 = vld [vmem:[%s3830_s1 + $0x170] sm:$0xff]   ;;  %v3096_v44 = vld [vmem:[%s3404_s10 + $0x7c] ss:$28 sps:$4 sm:$0xff]  }
  0x19   : > { %2585 = vmatpush3.bf16.msra.mxu0 %v3059_v13  ;;  %v3082_v35 = vld [vmem:[%s3404_s10 + $0x8] ss:$28 sps:$4 sm:$0xff]   ;;  %1561 = vmatprep.mubr.bf16.mxu1 %v3084_v36  ;;  %v3091_v43 = vld [vmem:[%s3404_s10 + $0x40] ss:$28 sps:$4 sm:$0xff]   ;;  %v3098_v45 = vld [vmem:[%s3830_s1 + $0x130] sm:$0xff]  }
  0x1a   : > { %2586 = vmatprep.subr.bf16.mxu0 %v3062_v16  ;;  %v3089_v39 = vld [vmem:[%s3404_s10 + $0x44] ss:$28 sps:$4 sm:$0xff]   ;;  %v3094_v46 = vld [vmem:[%s3404_s10 + $0x70] ss:$28 sps:$4 sm:$0xff]   ;;  %v3099_v49 = vld [vmem:[%s3404_s10 + $0x78] ss:$28 sps:$4 sm:$0xff]  }
  0x1b   : > { %2697 = vmatpush3.bf16.msra.mxu1 %v3061_v15  ;;  %v3100_v47 = vld [vmem:[%s3404_s10 + $0xac] ss:$28 sps:$4 sm:$0xff]   ;;  %v3103_v51 = vld [vmem:[%s3404_s10 + $0xb4] ss:$28 sps:$4 sm:$0xff]   ;;  %v3106_v53 = vld [vmem:[%s3404_s10 + $0xe4] ss:$28 sps:$4 sm:$0xff]  }
  0x1c   : > { %2698 = vmatprep.subr.bf16.mxu1 %v3064_v18  ;;  %v3109_v48 = vld [vmem:[%s3830_s1 + $0x168] sm:$0xff]   ;;  %v3123_v54 = vld [vmem:[%s3830_s1 + $0x160] sm:$0xff]   ;;  %v3137_v59 = vld [vmem:[%s3830_s1 + $0x158] sm:$0xff]  }
  0x1d   : > { %2587 = vmatpush3.bf16.msra.mxu0 %v3063_v17  ;;  %v3112_v50 = vld [vmem:[%s3830_s1 + $0x128] sm:$0xff]   ;;  %v3126_v56 = vld [vmem:[%s3830_s1 + $0x120] sm:$0xff]   ;;  %v3114_v60 = vld [vmem:[%s3404_s10 + $0x11c] ss:$28 sps:$4 sm:$0xff]  }
  0x1e   : > { %2588 = vmatprep.subr.bf16.mxu0 %v3066_v20  ;;  %v3102_v52 = vld [vmem:[%s3404_s10 + $0xa8] ss:$28 sps:$4 sm:$0xff]   ;;  %v3105_v55 = vld [vmem:[%s3404_s10 + $0xb0] ss:$28 sps:$4 sm:$0xff]   ;;  %v3108_v58 = vld [vmem:[%s3404_s10 + $0xe0] ss:$28 sps:$4 sm:$0xff]  }
  0x1f   : > { %2699 = vmatpush3.bf16.msra.mxu1 %v3065_v19  ;;  %v3110_v57 = vld [vmem:[%s3404_s10 + $0xec] ss:$28 sps:$4 sm:$0xff]   ;;  %v3140_v62 = vld [vmem:[%s3830_s1 + $0x118] sm:$0xff]   ;;  %v3142_v63 = vld [vmem:[%s3830_s1 + $0x180] sm:$0xff]  }
  0x20   : > { %2700 = vmatprep.subr.bf16.mxu1 %v3068_v22  ;;  %v3113_v61 = vld [vmem:[%s3404_s10 + $0xe8] ss:$28 sps:$4 sm:$0xff]   ;;  %v3116_v1 = vld [vmem:[%s3404_s10 + $0x118] ss:$28 sps:$4 sm:$0xff]   ;;  %v3119_v5 = vld [vmem:[%s3404_s10 + $0x120] ss:$28 sps:$4 sm:$0xff]  }
  0x21   : > { %2589 = vmatpush3.bf16.msra.mxu0 %v3067_v21  ;;  %v3117_v0 = vld [vmem:[%s3404_s10 + $0x124] ss:$28 sps:$4 sm:$0xff]   ;;  %v3152_v2 = vld [vmem:[%s3830_s1 + $0x150] sm:$0xff]   ;;  %v3124_v6 = vld [vmem:[%s3404_s10 + $0x15c] ss:$28 sps:$4 sm:$0xff]  }
  0x22   : > { %2590 = vmatprep.subr.bf16.mxu0 %v3070_v24  ;;  %v3120_v3 = vld [vmem:[%s3404_s10 + $0x154] ss:$28 sps:$4 sm:$0xff]   ;;  %v3166_v8 = vld [vmem:[%s3830_s1 + $0x148] sm:$0xff]   ;;  %v3180_v13 = vld [vmem:[%s3830_s1 + $0x140] sm:$0xff]  }
  0x23   : > { %2701 = vmatpush3.bf16.msra.mxu1 %v3069_v23  ;;  %v3155_v4 = vld [vmem:[%s3830_s1 + $0x110] sm:$0xff]   ;;  %v3128_v9 = vld [vmem:[%s3404_s10 + $0x18c] ss:$28 sps:$4 sm:$0xff]   ;;  %v3134_v15 = vld [vmem:[%s3404_s10 + $0x1c4] ss:$28 sps:$4 sm:$0xff]  }
  0x24   : > { %2702 = vmatprep.subr.bf16.mxu1 %v3072_v26  ;;  %v3122_v7 = vld [vmem:[%s3404_s10 + $0x150] ss:$28 sps:$4 sm:$0xff]   ;;  %v3127_v11 = vld [vmem:[%s3404_s10 + $0x158] ss:$28 sps:$4 sm:$0xff]   ;;  %v3130_v14 = vld [vmem:[%s3404_s10 + $0x188] ss:$28 sps:$4 sm:$0xff]  }
  0x25   : > { %2591 = vmatpush3.bf16.msra.mxu0 %v3071_v25  ;;  %v3169_v10 = vld [vmem:[%s3830_s1 + $0x108] sm:$0xff]   ;;  %v3131_v12 = vld [vmem:[%s3404_s10 + $0x194] ss:$28 sps:$4 sm:$0xff]   ;;  %v3183_v16 = vld [vmem:[%s3830_s1 + $0x100] sm:$0xff]  }
  0x26   : > { %2592 = vmatprep.subr.bf16.mxu0 %v3074_v28  ;;  %v3133_v17 = vld [vmem:[%s3404_s10 + $0x190] ss:$28 sps:$4 sm:$0xff]   ;;  %v3136_v19 = vld [vmem:[%s3404_s10 + $0x1c0] ss:$28 sps:$4 sm:$0xff]   ;;  %v3141_v21 = vld [vmem:[%s3404_s10 + $0x1c8] ss:$28 sps:$4 sm:$0xff]  }
  0x27   : > { %2703 = vmatpush3.bf16.msra.mxu1 %v3073_v27  ;;  %v3138_v18 = vld [vmem:[%s3404_s10 + $0x1cc] ss:$28 sps:$4 sm:$0xff]   ;;  %v3143_v20 = vld [vmem:[%s3404_s10 + $0x1fc] ss:$28 sps:$4 sm:$0xff]   ;;  %v3146_v22 = vld [vmem:[%s3404_s10 + $0x204] ss:$28 sps:$4 sm:$0xff]  }
  0x28   : > { %2704 = vmatprep.subr.bf16.mxu1 %v3076_v30  ;;  %v3145_v23 = vld [vmem:[%s3404_s10 + $0x1f8] ss:$28 sps:$4 sm:$0xff]   ;;  %v3148_v25 = vld [vmem:[%s3404_s10 + $0x200] ss:$28 sps:$4 sm:$0xff]   ;;  %v3151_v27 = vld [vmem:[%s3404_s10 + $0x230] ss:$28 sps:$4 sm:$0xff]  }
  0x29   : > { %2593 = vmatpush3.bf16.msra.mxu0 %v3075_v29  ;;  %v3149_v24 = vld [vmem:[%s3404_s10 + $0x234] ss:$28 sps:$4 sm:$0xff]   ;;  %v3153_v26 = vld [vmem:[%s3404_s10 + $0x23c] ss:$28 sps:$4 sm:$0xff]   ;;  %v3157_v28 = vld [vmem:[%s3404_s10 + $0x26c] ss:$28 sps:$4 sm:$0xff]  }
  0x2a   : > { %2802 = vmatprep.subr.bf16.mxu0 %v3081_v34  ;;  %v3156_v29 = vld [vmem:[%s3404_s10 + $0x238] ss:$28 sps:$4 sm:$0xff]   ;;  %v3163_v32 = vld [vmem:[%s3404_s10 + $0x2a4] ss:$28 sps:$4 sm:$0xff]   ;;  %v3167_v34 = vld [vmem:[%s3404_s10 + $0x2ac] ss:$28 sps:$4 sm:$0xff]  }
  0x2b   : > { %2705 = vmatpush3.bf16.msra.mxu1 %v3080_v33  ;;  %v3160_v30 = vld [vmem:[%s3404_s10 + $0x274] ss:$28 sps:$4 sm:$0xff]   ;;  %v3171_v36 = vld [vmem:[%s3404_s10 + $0x2dc] ss:$28 sps:$4 sm:$0xff]  }
  0x2c   : > { %1401 = vmatmul.mubr.bf16.vlgmr.msra.gmra.mxu0 %v3077_v31  ;;  %2955 = vmatprep.subr.bf16.mxu1 %v3142_v63  ;;  %v3159_v31 = vld [vmem:[%s3404_s10 + $0x268] ss:$28 sps:$4 sm:$0xff]   ;;  %v3162_v33 = vld [vmem:[%s3404_s10 + $0x270] ss:$28 sps:$4 sm:$0xff]  }
  0x2d   : > { %2803 = vmatpush3.bf16.msra.mxu0 %v3085_v37  ;;  %1408 = vmatprep.mubr.bf16.mxu0 %v3086_v38  ;;  %v3170_v37 = vld [vmem:[%s3404_s10 + $0x2a8] ss:$28 sps:$4 sm:$0xff]  }
  0x2e   : > { %1562 = vmatmul.mubr.bf16.vlgmr.msra.gmra.mxu1 %v3082_v35  ;;  %2804 = vmatprep.subr.bf16.mxu0 %v3095_v42  ;;  %v3165_v35 = vld [vmem:[%s3404_s10 + $0x2a0] ss:$28 sps:$4 sm:$0xff]  }
  0x2f   : > { %1569 = vmatprep.mubr.bf16.mxu1 %v3089_v39  ;;  %2956 = vmatpush3.bf16.msra.mxu1 %v3142_v63  ;;  %v3174_v38 = vld [vmem:[%s3404_s10 + $0x2e4] ss:$28 sps:$4 sm:$0xff]   ;;  %v3173_v39 = vld [vmem:[%s3404_s10 + $0x2d8] ss:$28 sps:$4 sm:$0xff]  }
  0x30   : > { %v3181_v42 = vld [vmem:[%s3404_s10 + $0x31c] ss:$28 sps:$4 sm:$0xff]  }
  0x31   : > { %2805 = vmatpush3.bf16.msra.mxu0 %v3098_v45  ;;  %v3184_v45 = vld [vmem:[%s3404_s10 + $0x318] ss:$28 sps:$4 sm:$0xff]  }
  0x32   : > { %2806 = vmatprep.subr.bf16.mxu0 %v3109_v48  ;;  %v3193_v48 = vld [vmem:[%s3404_s10 + $0x14] ss:$28 sps:$4 sm:$0xff]  }
  0x33   : > { %v3206_v63 = vld [vmem:[%s3404_s10 + $0xb8] ss:$28 sps:$4 sm:$0xff]  }
  0x34   : > { %1409 = vmatmul.mubr.bf16.gmra.mxu0 %v3088_v40  ;;  %v3177_v40 = vld [vmem:[%s3404_s10 + $0x314] ss:$28 sps:$4 sm:$0xff]  }
  0x35   : > { %1416 = vmatprep.mubr.bf16.mxu0 %v3092_v41  ;;  %2807 = vmatpush3.bf16.msra.mxu0 %v3112_v50  ;;  %v3176_v41 = vld [vmem:[%s3404_s10 + $0x2e0] ss:$28 sps:$4 sm:$0xff]   ;;  %v3194_v50 = vld [vmem:[%s3404_s10 + $0x18] ss:$28 sps:$4 sm:$0xff]  }
  0x36   : > { %1570 = vmatmul.mubr.bf16.gmra.mxu1 %v3091_v43  ;;  %2808 = vmatprep.subr.bf16.mxu0 %v3123_v54  ;;  %v3179_v43 = vld [vmem:[%s3404_s10 + $0x310] ss:$28 sps:$4 sm:$0xff]   ;;  %v3202_v54 = vld [vmem:[%s3404_s10 + $0x88] ss:$28 sps:$4 sm:$0xff]  }
  0x37   : > { %1577 = vmatprep.mubr.bf16.mxu1 %v3096_v44  ;;  %v3185_v44 = vld [vmem:[%s3404_s10 + $0x34c] ss:$28 sps:$4 sm:$0xff]  }
  0x39   : > { %2809 = vmatpush3.bf16.msra.mxu0 %v3126_v56  ;;  %v3199_v56 = vld [vmem:[%s3404_s10 + $0x84] ss:$28 sps:$4 sm:$0xff]  }
  0x3a   : > { %2810 = vmatprep.subr.bf16.mxu0 %v3137_v59  ;;  %v3201_v59 = vld [vmem:[%s3404_s10 + $0x80] ss:$28 sps:$4 sm:$0xff]  }
  0x3c   : > { %1417 = vmatmul.mubr.bf16.gmra.mxu0 %v3094_v46  ;;  %v3188_v46 = vld [vmem:[%s3404_s10 + $0x354] ss:$28 sps:$4 sm:$0xff]  }
  0x3d   : > { %1424 = vmatprep.mubr.bf16.mxu0 %v3100_v47  ;;  %2811 = vmatpush3.bf16.msra.mxu0 %v3140_v62  ;;  %v3187_v47 = vld [vmem:[%s3404_s10 + $0x348] ss:$28 sps:$4 sm:$0xff]  }
  0x3e   : > { %1578 = vmatmul.mubr.bf16.gmra.mxu1 %v3099_v49  ;;  %2812 = vmatprep.subr.bf16.mxu0 %v3152_v2  ;;  %v3190_v49 = vld [vmem:[%s3404_s10 + $0x350] ss:$28 sps:$4 sm:$0xff]   ;;  %v3218_v62 = vld [vmem:[%s3404_s10 + $0x168] ss:$28 sps:$4 sm:$0xff]   ;;  %v3226_v2 = vld [vmem:[%s3404_s10 + $0x1d8] ss:$28 sps:$4 sm:$0xff]  }
  0x3f   : > { %1585 = vmatprep.mubr.bf16.mxu1 %v3103_v51  ;;  %v3191_v51 = vld [vmem:[%s3404_s10 + $0x10] ss:$28 sps:$4 sm:$0xff]  }
  0x41   : > { %2813 = vmatpush3.bf16.msra.mxu0 %v3155_v4  ;;  %v3212_v4 = vld [vmem:[%s3404_s10 + $0x12c] ss:$28 sps:$4 sm:$0xff]  }
  0x42   : > { %2814 = vmatprep.subr.bf16.mxu0 %v3166_v8  ;;  %v3215_v8 = vld [vmem:[%s3404_s10 + $0x164] ss:$28 sps:$4 sm:$0xff]  }
  0x44   : > { %1425 = vmatmul.mubr.bf16.gmra.mxu0 %v3102_v52  ;;  %v3196_v52 = vld [vmem:[%s3404_s10 + $0x4c] ss:$28 sps:$4 sm:$0xff]  }
  0x45   : > { %1432 = vmatprep.mubr.bf16.mxu0 %v3106_v53  ;;  %2815 = vmatpush3.bf16.msra.mxu0 %v3169_v10  ;;  %v3195_v53 = vld [vmem:[%s3404_s10 + $0x50] ss:$28 sps:$4 sm:$0xff]   ;;  %v3242_v10 = vld [vmem:[%s3404_s10 + $0x2b8] ss:$28 sps:$4 sm:$0xff]  }
  0x46   : > { %1586 = vmatmul.mubr.bf16.gmra.mxu1 %v3105_v55  ;;  %2816 = vmatprep.subr.bf16.mxu0 %v3180_v13  ;;  %v3198_v55 = vld [vmem:[%s3404_s10 + $0x48] ss:$28 sps:$4 sm:$0xff]   ;;  %v3243_v13 = vld [vmem:[%s3404_s10 + $0x2f0] ss:$28 sps:$4 sm:$0xff]  }
  0x47   : > { %1593 = vmatprep.mubr.bf16.mxu1 %v3110_v57  ;;  %v3203_v57 = vld [vmem:[%s3404_s10 + $0xc0] ss:$28 sps:$4 sm:$0xff]  }
  0x49   : > { %2817 = vmatpush3.bf16.msra.mxu0 %v3183_v16  ;;  %v3223_v16 = vld [vmem:[%s3404_s10 + $0x1d4] ss:$28 sps:$4 sm:$0xff]  }
  0x4c   : > { %1433 = vmatmul.mubr.bf16.gmra.mxu0 %v3108_v58  ;;  %v3210_v58 = vld [vmem:[%s3404_s10 + $0xf8] ss:$28 sps:$4 sm:$0xff]  }
  0x4d   : > { %1440 = vmatprep.mubr.bf16.mxu0 %v3114_v60  ;;  %v3204_v60 = vld [vmem:[%s3404_s10 + $0xbc] ss:$28 sps:$4 sm:$0xff]  }
  0x4e   : > { %1594 = vmatmul.mubr.bf16.gmra.mxu1 %v3113_v61  ;;  %v3211_v61 = vld [vmem:[%s3404_s10 + $0x130] ss:$28 sps:$4 sm:$0xff]  }
  0x4f   : > { %1601 = vmatprep.mubr.bf16.mxu1 %v3117_v0  ;;  %v3207_v0 = vld [vmem:[%s3404_s10 + $0xf4] ss:$28 sps:$4 sm:$0xff]  }
  0x54   : > { %1441 = vmatmul.mubr.bf16.gmra.mxu0 %v3116_v1  ;;  %v3219_v1 = vld [vmem:[%s3404_s10 + $0x1a0] ss:$28 sps:$4 sm:$0xff]  }
  0x55   : > { %1448 = vmatprep.mubr.bf16.mxu0 %v3120_v3  ;;  %v3209_v3 = vld [vmem:[%s3404_s10 + $0xf0] ss:$28 sps:$4 sm:$0xff]  }
  0x56   : > { %1602 = vmatmul.mubr.bf16.gmra.mxu1 %v3119_v5  ;;  %v3227_v5 = vld [vmem:[%s3404_s10 + $0x210] ss:$28 sps:$4 sm:$0xff]  }
  0x57   : > { %1609 = vmatprep.mubr.bf16.mxu1 %v3124_v6  ;;  %v3234_v6 = vld [vmem:[%s3404_s10 + $0x248] ss:$28 sps:$4 sm:$0xff]  }
  0x5c   : > { %1449 = vmatmul.mubr.bf16.gmra.mxu0 %v3122_v7  ;;  %v3214_v7 = vld [vmem:[%s3404_s10 + $0x128] ss:$28 sps:$4 sm:$0xff]  }
  0x5d   : > { %1456 = vmatprep.mubr.bf16.mxu0 %v3128_v9  ;;  %v3235_v9 = vld [vmem:[%s3404_s10 + $0x280] ss:$28 sps:$4 sm:$0xff]  }
  0x5e   : > { %1610 = vmatmul.mubr.bf16.gmra.mxu1 %v3127_v11  ;;  %v3217_v11 = vld [vmem:[%s3404_s10 + $0x160] ss:$28 sps:$4 sm:$0xff]  }
  0x5f   : > { %1617 = vmatprep.mubr.bf16.mxu1 %v3131_v12  ;;  %v3220_v12 = vld [vmem:[%s3404_s10 + $0x19c] ss:$28 sps:$4 sm:$0xff]  }
  0x64   : > { %1457 = vmatmul.mubr.bf16.gmra.mxu0 %v3130_v14  ;;  %v3250_v14 = vld [vmem:[%s3404_s10 + $0x328] ss:$28 sps:$4 sm:$0xff]  }
  0x65   : > { %1464 = vmatprep.mubr.bf16.mxu0 %v3134_v15  ;;  %v3222_v15 = vld [vmem:[%s3404_s10 + $0x198] ss:$28 sps:$4 sm:$0xff]  }
  0x66   : > { %1618 = vmatmul.mubr.bf16.gmra.mxu1 %v3133_v17  ;;  %v3251_v17 = vld [vmem:[%s3404_s10 + $0x360] ss:$28 sps:$4 sm:$0xff]  }
  0x67   : > { %1625 = vmatprep.mubr.bf16.mxu1 %v3138_v18  ;;  %v3255_v18 = vld [vmem:[%s3832_s3 + $0x38] sm:$0xff]  }
  0x68   : > { %2989 = vmatprep.subr.bf16.mxu1 %v3255_v18 }
  0x6c   : > { %1465 = vmatmul.mubr.bf16.gmra.mxu0 %v3136_v19  ;;  %v3225_v19 = vld [vmem:[%s3404_s10 + $0x1d0] ss:$28 sps:$4 sm:$0xff]  }
  0x6d   : > { %1472 = vmatprep.mubr.bf16.mxu0 %v3143_v20  ;;  %v3256_v20 = vld [vmem:[%s3832_s3 + $0x30] sm:$0xff]  }
  0x6e   : > { %1626 = vmatmul.mubr.bf16.gmra.mxu1 %v3141_v21  ;;  %v3228_v21 = vld [vmem:[%s3404_s10 + $0x20c] ss:$28 sps:$4 sm:$0xff]  }
  0x6f   : > { %1633 = vmatprep.mubr.bf16.mxu1 %v3146_v22 }
  0x74   : > { %1473 = vmatmul.mubr.bf16.gmra.mxu0 %v3145_v23  ;;  %v3257_v23 = vld [vmem:[%s3832_s3 + $0x28] sm:$0xff]  }
  0x75   : > { %1480 = vmatprep.mubr.bf16.mxu0 %v3149_v24  ;;  %v3593_v24 = vld [vmem:[%s3831_s2] ss:$0 sm:$0xff] }
  0x76   : > { %1634 = vmatmul.mubr.bf16.gmra.mxu1 %v3148_v25 }
  0x77   : > { %1641 = vmatprep.mubr.bf16.mxu1 %v3153_v26 }
  0x7c   : > { %1481 = vmatmul.mubr.bf16.gmra.mxu0 %v3151_v27 }
  0x7d   : > { %1488 = vmatprep.mubr.bf16.mxu0 %v3157_v28 }
  0x7e   : > { %1642 = vmatmul.mubr.bf16.gmra.mxu1 %v3156_v29  ;;  %v3230_v29 = vld [vmem:[%s3404_s10 + $0x208] ss:$28 sps:$4 sm:$0xff]  }
  0x7f   : > { %1649 = vmatprep.mubr.bf16.mxu1 %v3160_v30  ;;  %v3258_v30 = vld [vmem:[%s3832_s3 + $0x20] sm:$0xff]  }
  0x84   : > { %1489 = vmatmul.mubr.bf16.gmra.mxu0 %v3159_v31 }
  0x85   : > { %1496 = vmatprep.mubr.bf16.mxu0 %v3163_v32 }
  0x86   : > { %1650 = vmatmul.mubr.bf16.gmra.mxu1 %v3162_v33  ;;  %v3231_v33 = vld [vmem:[%s3404_s10 + $0x244] ss:$28 sps:$4 sm:$0xff]  }
  0x87   : > { %1657 = vmatprep.mubr.bf16.mxu1 %v3167_v34 }
  0x8c   : > { %1497 = vmatmul.mubr.bf16.gmra.mxu0 %v3165_v35 }
  0x8d   : > { %1504 = vmatprep.mubr.bf16.mxu0 %v3171_v36 }
  0x8e   : > { %1658 = vmatmul.mubr.bf16.gmra.mxu1 %v3170_v37 }
  0x8f   : > { %1665 = vmatprep.mubr.bf16.mxu1 %v3174_v38 }
  0x94   : > { %1505 = vmatmul.mubr.bf16.gmra.mxu0 %v3173_v39 }
  0x95   : > { %1512 = vmatprep.mubr.bf16.mxu0 %v3177_v40  ;;  %v3259_v40 = vld [vmem:[%s3832_s3 + $0x18] sm:$0xff]  }
  0x96   : > { %1666 = vmatmul.mubr.bf16.gmra.mxu1 %v3176_v41 }
  0x97   : > { %1673 = vmatprep.mubr.bf16.mxu1 %v3181_v42 }
  0x9c   : > { %1513 = vmatmul.mubr.bf16.gmra.mxu0 %v3179_v43 }
  0x9d   : > { %1520 = vmatprep.mubr.bf16.mxu0 %v3185_v44 }
  0x9e   : > { %1674 = vmatmul.mubr.bf16.gmra.mxu1 %v3184_v45 }
  0x9f   : > { %1681 = vmatprep.mubr.bf16.mxu1 %v3188_v46 }
  0xa4   : > { %1521 = vmatmul.mubr.bf16.gmra.mxu0 %v3187_v47 }
  0xa5   : > { %1722 = vmatprep.mubr.bf16.mxu0 %v3193_v48 }
  0xa6   : > { %1682 = vmatmul.mubr.bf16.gmra.mxu1 %v3190_v49  ;;  %v3233_v49 = vld [vmem:[%s3404_s10 + $0x240] ss:$28 sps:$4 sm:$0xff]  }
  0xa7   : > { %2957 = vmatprep.mubr.msk.bf16.mxu1 %vm1319_vm0, %v3194_v50  ;;  %v3260_v50 = vld [vmem:[%s3832_s3 + $0x10] sm:$0xff]  }
  0xac   : > { %1723 = vmatmul.mubr.bf16.vlgmr.msra.gmra.mxu0 %v3191_v51 }
  0xad   : > { %1730 = vmatprep.mubr.bf16.mxu0 %v3196_v52 }
  0xae   : > { %2958 = vmatmul.mubr.msk.bf16.vlgmr.msra.gmra.mxu1 %vm1319_vm0, %v3195_v53  ;;  %v3236_v53 = vld [vmem:[%s3404_s10 + $0x27c] ss:$28 sps:$4 sm:$0xff]  }
  0xaf   : > { %2961 = vmatprep.mubr.msk.bf16.mxu1 %vm1319_vm0, %v3202_v54  ;;  %2990 = vmatpush3.bf16.msra.mxu1 %v3255_v18 }
  0xb0   : > { %2991 = vmatprep.subr.bf16.mxu1 %v3256_v20 }
  0xb3   : > { %2992 = vmatpush3.bf16.msra.mxu1 %v3256_v20 }
  0xb4   : > { %1731 = vmatmul.mubr.bf16.gmra.mxu0 %v3198_v55  ;;  %2993 = vmatprep.subr.bf16.mxu1 %v3257_v23 }
  0xb5   : > { %1738 = vmatprep.mubr.bf16.mxu0 %v3199_v56 }
  0xb6   : > { %2962 = vmatmul.mubr.msk.bf16.gmra.mxu1 %vm1319_vm0, %v3203_v57 }
  0xb7   : > { %2965 = vmatprep.mubr.msk.bf16.mxu1 %vm1319_vm0, %v3210_v58  ;;  %2994 = vmatpush3.bf16.msra.mxu1 %v3257_v23 }
  0xb8   : > { %2995 = vmatprep.subr.bf16.mxu1 %v3258_v30 }
  0xbb   : > { %2996 = vmatpush3.bf16.msra.mxu1 %v3258_v30 }
  0xbc   : > { %1739 = vmatmul.mubr.bf16.gmra.mxu0 %v3201_v59  ;;  %2997 = vmatprep.subr.bf16.mxu1 %v3259_v40 }
  0xbd   : > { %1746 = vmatprep.mubr.bf16.mxu0 %v3204_v60  ;;  %v3261_v60 = vld [vmem:[%s3832_s3 + $0x8] sm:$0xff]  }
  0xbe   : > { %2966 = vmatmul.mubr.msk.bf16.gmra.mxu1 %vm1319_vm0, %v3211_v61 }
  0xbf   : > { %2969 = vmatprep.mubr.msk.bf16.mxu1 %vm1319_vm0, %v3218_v62  ;;  %2998 = vmatpush3.bf16.msra.mxu1 %v3259_v40 }
  0xc0   : > { %2999 = vmatprep.subr.bf16.mxu1 %v3260_v50 }
  0xc3   : > { %3000 = vmatpush3.bf16.msra.mxu1 %v3260_v50 }
  0xc4   : > { %1747 = vmatmul.mubr.bf16.gmra.mxu0 %v3206_v63  ;;  %3001 = vmatprep.subr.bf16.mxu1 %v3261_v60 }
  0xc5   : > { %1754 = vmatprep.mubr.bf16.mxu0 %v3207_v0 }
  0xc6   : > { %2970 = vmatmul.mubr.msk.bf16.gmra.mxu1 %vm1319_vm0, %v3219_v1 }
  0xc7   : > { %2973 = vmatprep.mubr.msk.bf16.mxu1 %vm1319_vm0, %v3226_v2  ;;  %3002 = vmatpush3.bf16.msra.mxu1 %v3261_v60 }
  0xcc   : > { %1755 = vmatmul.mubr.bf16.gmra.mxu0 %v3209_v3 }
  0xcd   : > { %1762 = vmatprep.mubr.bf16.mxu0 %v3212_v4 }
  0xce   : > { %2974 = vmatmul.mubr.msk.bf16.gmra.mxu1 %vm1319_vm0, %v3227_v5  ;;  %v3238_v5 = vld [vmem:[%s3404_s10 + $0x278] ss:$28 sps:$4 sm:$0xff]  }
  0xcf   : > { %2977 = vmatprep.mubr.msk.bf16.mxu1 %vm1319_vm0, %v3234_v6  ;;  %v3262_v6 = vld [vmem:[%s3832_s3] sm:$0xff]  }
  0xd0   : > { %3003 = vmatprep.subr.bf16.mxu1 %v3262_v6 }
  0xd1   : > { %3004 = vmatpush3.bf16.msra.mxu1 %v3262_v6 }
  0xd4   : > { %1763 = vmatmul.mubr.bf16.gmra.mxu0 %v3214_v7 }
  0xd5   : > { %1770 = vmatprep.mubr.bf16.mxu0 %v3215_v8 }
  0xd6   : > { %2978 = vmatmul.mubr.msk.bf16.gmra.mxu1 %vm1319_vm0, %v3235_v9  ;;  %v3241_v9 = vld [vmem:[%s3404_s10 + $0x2b4] ss:$28 sps:$4 sm:$0xff]  }
  0xd7   : > { %2981 = vmatprep.mubr.msk.bf16.mxu1 %vm1319_vm0, %v3242_v10 }
  0xdc   : > { %1771 = vmatmul.mubr.bf16.gmra.mxu0 %v3217_v11 }
  0xdd   : > { %1778 = vmatprep.mubr.bf16.mxu0 %v3220_v12 }
  0xde   : > { %2982 = vmatmul.mubr.msk.bf16.gmra.mxu1 %vm1319_vm0, %v3243_v13 }
  0xdf   : > { %2985 = vmatprep.mubr.msk.bf16.mxu1 %vm1319_vm0, %v3250_v14 }
  0xe4   : > { %1779 = vmatmul.mubr.bf16.gmra.mxu0 %v3222_v15 }
  0xe5   : > { %1786 = vmatprep.mubr.bf16.mxu0 %v3223_v16 }
  0xe6   : > { %2986 = vmatmul.mubr.msk.bf16.gmra.mxu1 %vm1319_vm0, %v3251_v17 }
  0xec   : > { %v2594_v22 = vpop.f32.mrf.mxu0  ;;  %1787 = vmatmul.mubr.bf16.gmra.mxu0 %v3225_v19 }
  0xed   : > { %1794 = vmatprep.mubr.bf16.mxu0 %v3228_v21 }
  0xee   : > { %v2595_v25 = vpop.f32.mrf.mxu0  ;;  %v2706_v27 = vpop.f32.mrf.mxu1 }
  0xef   : > { %v2596_v26 = vadd.f32 %v2595_v25, %v2594_v22  ;;  %v3239_v25 = vld [vmem:[%s3404_s10 + $0x2b0] ss:$28 sps:$4 sm:$0xff]  }
  0xf0   : > { %v2597_v28 = vpop.f32.mrf.mxu0  ;;  %v2707_v32 = vpop.f32.mrf.mxu1 }
  0xf1   : > { %v1403_v31 = vadd.f32 %v2596_v26, %v3593_v24  ;;  %v2708_v34 = vadd.f32 %v2707_v32, %v2706_v27 }
  0xf2   : > { %v2598_v35 = vpop.f32.mrf.mxu0  ;;  %v2709_v37 = vpop.f32.mrf.mxu1 }
  0xf3   : > { %v2599_v36 = vadd.f32 %v2598_v35, %v2597_v28  ;;  %v3601_v38 = vadd.f32 %v2708_v34, %v1403_v31  ;;  %v3246_v28 = vld [vmem:[%s3404_s10 + $0x2ec] ss:$28 sps:$4 sm:$0xff]  }
  0xf4   : > { %v2600_v39 = vpop.f32.mrf.mxu0  ;;  %1795 = vmatmul.mubr.bf16.gmra.mxu0 %v3230_v29  ;;  %v2710_v42 = vpop.f32.mrf.mxu1 }
  0xf5   : > { %v1406_v41 = vadd.f32 %v2599_v36, %v3593_v24  ;;  %1802 = vmatprep.mubr.bf16.mxu0 %v3231_v33  ;;  %v2711_v43 = vadd.f32 %v2710_v42, %v2709_v37 }
  0xf6   : > { %v2601_v44 = vpop.f32.mrf.mxu0  ;;  %v2712_v46 = vpop.f32.mrf.mxu1 }
  0xf7   : > { %v2602_v45 = vadd.f32 %v2601_v44, %v2600_v39  ;;  %v3607_v47 = vadd.f32 %v2711_v43, %v1406_v41  ;;  %v3244_v44 = vld [vmem:[%s3404_s10 + $0x2e8] ss:$28 sps:$4 sm:$0xff]  }
  0xf8   : > { %v2603_v48 = vpop.f32.mrf.mxu0  ;;  %v2713_v52 = vpop.f32.mrf.mxu1 }
  0xf9   : > { %v1411_v51 = vadd.f32 %v2602_v45, %v3593_v24  ;;  %v2714_v54 = vadd.f32 %v2713_v52, %v2712_v46 }
  0xfa   : > { %v2604_v55 = vpop.f32.mrf.mxu0  ;;  %v2715_v57 = vpop.f32.mrf.mxu1 }
  0xfb   : > { %v2605_v56 = vadd.f32 %v2604_v55, %v2603_v48  ;;  %v3615_v58 = vadd.f32 %v2714_v54, %v1411_v51  ;;  %v3249_v48 = vld [vmem:[%s3404_s10 + $0x324] ss:$28 sps:$4 sm:$0xff]  }
  0xfc   : > { %v2606_v59 = vpop.f32.mrf.mxu0  ;;  %1803 = vmatmul.mubr.bf16.gmra.mxu0 %v3233_v49  ;;  %v2716_v62 = vpop.f32.mrf.mxu1 }
  0xfd   : > { %v1414_v61 = vadd.f32 %v2605_v56, %v3593_v24  ;;  %1810 = vmatprep.mubr.bf16.mxu0 %v3236_v53  ;;  %v2717_v63 = vadd.f32 %v2716_v62, %v2715_v57 }
  0xfe   : > { %v2607_v0 = vpop.f32.mrf.mxu0  ;;  %v2718_v2 = vpop.f32.mrf.mxu1 }
  0xff   : > { %v2608_v1 = vadd.f32 %v2607_v0, %v2606_v59  ;;  %v3621_v3 = vadd.f32 %v2717_v63, %v1414_v61  ;;  %v3247_v0 = vld [vmem:[%s3404_s10 + $0x320] ss:$28 sps:$4 sm:$0xff]  }
 0x100   : > { %v2609_v4 = vpop.f32.mrf.mxu0  ;;  %v2719_v8 = vpop.f32.mrf.mxu1 }
 0x101   : > { %v1419_v7 = vadd.f32 %v2608_v1, %v3593_v24  ;;  %v2720_v10 = vadd.f32 %v2719_v8, %v2718_v2 }
 0x102   : > { %v2610_v11 = vpop.f32.mrf.mxu0  ;;  %v2721_v13 = vpop.f32.mrf.mxu1 }
 0x103   : > { %v2611_v12 = vadd.f32 %v2610_v11, %v2609_v4  ;;  %v3629_v14 = vadd.f32 %v2720_v10, %v1419_v7  ;;  %v3254_v4 = vld [vmem:[%s3404_s10 + $0x35c] ss:$28 sps:$4 sm:$0xff]  }
 0x104   : > { %v2612_v15 = vpop.f32.mrf.mxu0  ;;  %1811 = vmatmul.mubr.bf16.gmra.mxu0 %v3238_v5  ;;  %v2722_v17 = vpop.f32.mrf.mxu1 }
 0x105   : > { %v1422_v16 = vadd.f32 %v2611_v12, %v3593_v24  ;;  %1818 = vmatprep.mubr.bf16.mxu0 %v3241_v9  ;;  %v2723_v18 = vadd.f32 %v2722_v17, %v2721_v13 }
 0x106   : > { %v2613_v19 = vpop.f32.mrf.mxu0  ;;  %v2724_v21 = vpop.f32.mrf.mxu1 }
 0x107   : > { %v2614_v20 = vadd.f32 %v2613_v19, %v2612_v15  ;;  %v3632_v22 = vadd.f32 %v2723_v18, %v1422_v16 }
 0x108   : > { %v2615_v23 = vpop.f32.mrf.mxu0  ;;  %v2725_v27 = vpop.f32.mrf.mxu1 }
 0x109   : > { %v1427_v26 = vadd.f32 %v2614_v20, %v3593_v24  ;;  %v2726_v29 = vadd.f32 %v2725_v27, %v2724_v21  ;;  %v3252_v20 = vld [vmem:[%s3404_s10 + $0x358] ss:$28 sps:$4 sm:$0xff]   ;;  %s2388_s10 = sshll.u32 %s3836_s25, 3 }
 0x10a   : > { %v2616_v30 = vpop.f32.mrf.mxu0  ;;  %v2727_v32 = vpop.f32.mrf.mxu1  ;;  %s3760_s7 = scalar_lea.vmem %s3834_s5, %s2388_s10 }
 0x10b   : > { %v2617_v31 = vadd.f32 %v2616_v30, %v2615_v23  ;;  %v3637_v33 = vadd.f32 %v2726_v29, %v1427_v26 }
 0x10c   : > { %v2618_v34 = vpop.f32.mrf.mxu0  ;;  %1819 = vmatmul.mubr.bf16.gmra.mxu0 %v3239_v25  ;;  %v2728_v36 = vpop.f32.mrf.mxu1 }
 0x10d   : > { %v1430_v35 = vadd.f32 %v2617_v31, %v3593_v24  ;;  %1826 = vmatprep.mubr.bf16.mxu0 %v3246_v28  ;;  %v2729_v37 = vadd.f32 %v2728_v36, %v2727_v32 }
 0x10e   : > { %v2619_v39 = vpop.f32.mrf.mxu0  ;;  %v2730_v41 = vpop.f32.mrf.mxu1 }
 0x10f   : > { %v2620_v40 = vadd.f32 %v2619_v39, %v2618_v34  ;;  %v3640_v42 = vadd.f32 %v2729_v37, %v1430_v35 }
 0x110   : > { %v2621_v43 = vpop.f32.mrf.mxu0  ;;  %v2731_v46 = vpop.f32.mrf.mxu1 }
 0x111   : > { %v1435_v45 = vadd.f32 %v2620_v40, %v3593_v24  ;;  %v2732_v49 = vadd.f32 %v2731_v46, %v2730_v41 }
 0x112   : > { %v2622_v50 = vpop.f32.mrf.mxu0  ;;  %v2733_v52 = vpop.f32.mrf.mxu1 }
 0x113   : > { %v2623_v51 = vadd.f32 %v2622_v50, %v2621_v43  ;;  %v3645_v53 = vadd.f32 %v2732_v49, %v1435_v45 }
 0x114   : > { %v2624_v54 = vpop.f32.mrf.mxu0  ;;  %1827 = vmatmul.mubr.bf16.gmra.mxu0 %v3244_v44  ;;  %v2734_v56 = vpop.f32.mrf.mxu1 }
 0x115   : > { %v1438_v55 = vadd.f32 %v2623_v51, %v3593_v24  ;;  %1834 = vmatprep.mubr.bf16.mxu0 %v3249_v48  ;;  %v2735_v57 = vadd.f32 %v2734_v56, %v2733_v52 }
 0x116   : > { %v2625_v59 = vpop.f32.mrf.mxu0  ;;  %v2736_v61 = vpop.f32.mrf.mxu1 }
 0x117   : > { %v2626_v60 = vadd.f32 %v2625_v59, %v2624_v54  ;;  %v3648_v62 = vadd.f32 %v2735_v57, %v1438_v55 }
 0x118   : > { %v2627_v63 = vpop.f32.mrf.mxu0  ;;  %v2737_v2 = vpop.f32.mrf.mxu1 }
 0x119   : > { %v1443_v1 = vadd.f32 %v2626_v60, %v3593_v24  ;;  %v2738_v5 = vadd.f32 %v2737_v2, %v2736_v61 }
 0x11a   : > { %v2628_v6 = vpop.f32.mrf.mxu0  ;;  %v2739_v8 = vpop.f32.mrf.mxu1 }
 0x11b   : > { %v2629_v7 = vadd.f32 %v2628_v6, %v2627_v63  ;;  %v3653_v9 = vadd.f32 %v2738_v5, %v1443_v1 }
 0x11c   : > { %v2630_v10 = vpop.f32.mrf.mxu0  ;;  %1835 = vmatmul.mubr.bf16.gmra.mxu0 %v3247_v0  ;;  %v2740_v12 = vpop.f32.mrf.mxu1 }
 0x11d   : > { %v1446_v11 = vadd.f32 %v2629_v7, %v3593_v24  ;;  %1842 = vmatprep.mubr.bf16.mxu0 %v3254_v4  ;;  %v2741_v13 = vadd.f32 %v2740_v12, %v2739_v8 }
 0x11e   : > { %v2631_v15 = vpop.f32.mrf.mxu0  ;;  %v2742_v17 = vpop.f32.mrf.mxu1 }
 0x11f   : > { %v2632_v16 = vadd.f32 %v2631_v15, %v2630_v10  ;;  %v3656_v18 = vadd.f32 %v2741_v13, %v1446_v11 }
 0x120   : > { %v2633_v19 = vpop.f32.mrf.mxu0  ;;  %v2743_v23 = vpop.f32.mrf.mxu1 }
 0x121   : > { %v1451_v21 = vadd.f32 %v2632_v16, %v3593_v24  ;;  %v2744_v25 = vadd.f32 %v2743_v23, %v2742_v17 }
 0x122   : > { %v2634_v26 = vpop.f32.mrf.mxu0  ;;  %v2745_v28 = vpop.f32.mrf.mxu1 }
 0x123   : > { %v2635_v27 = vadd.f32 %v2634_v26, %v2633_v19  ;;  %v3660_v29 = vadd.f32 %v2744_v25, %v1451_v21 }
 0x124   : > { %v2636_v30 = vpop.f32.mrf.mxu0  ;;  %1843 = vmatmul.mubr.bf16.gmra.mxu0 %v3252_v20  ;;  %v2746_v32 = vpop.f32.mrf.mxu1 }
 0x125   : > { %v1454_v31 = vadd.f32 %v2635_v27, %v3593_v24  ;;  %v2747_v34 = vadd.f32 %v2746_v32, %v2745_v28 }
 0x126   : > { %v2637_v35 = vpop.f32.mrf.mxu0  ;;  %v2748_v37 = vpop.f32.mrf.mxu1 }
 0x127   : > { %v2638_v36 = vadd.f32 %v2637_v35, %v2636_v30  ;;  %v3663_v39 = vadd.f32 %v2747_v34, %v1454_v31 }
 0x128   : > { %v2639_v40 = vpop.f32.mrf.mxu0  ;;  %v2749_v43 = vpop.f32.mrf.mxu1 }
 0x129   : > { %v1459_v41 = vadd.f32 %v2638_v36, %v3593_v24  ;;  %v2750_v44 = vadd.f32 %v2749_v43, %v2748_v37 }
 0x12a   : > { %v2640_v45 = vpop.f32.mrf.mxu0  ;;  %v2751_v48 = vpop.f32.mrf.mxu1 }
 0x12b   : > { %v2641_v46 = vadd.f32 %v2640_v45, %v2639_v40  ;;  %v3666_v49 = vadd.f32 %v2750_v44, %v1459_v41 }
 0x12c   : > { %v2642_v50 = vpop.f32.mrf.mxu0  ;;  %v2752_v52 = vpop.f32.mrf.mxu1 }
 0x12d   : > { %v1462_v51 = vadd.f32 %v2641_v46, %v3593_v24  ;;  %v2753_v54 = vadd.f32 %v2752_v52, %v2751_v48 }
 0x12e   : > { %v2643_v55 = vpop.f32.mrf.mxu0  ;;  %v2754_v57 = vpop.f32.mrf.mxu1 }
 0x12f   : > { %v2644_v56 = vadd.f32 %v2643_v55, %v2642_v50  ;;  %v3669_v59 = vadd.f32 %v2753_v54, %v1462_v51 }
 0x130   : > { %v2645_v60 = vpop.f32.mrf.mxu0  ;;  %v2755_v63 = vpop.f32.mrf.mxu1 }
 0x131   : > { %v1467_v61 = vadd.f32 %v2644_v56, %v3593_v24  ;;  %v2756_v0 = vadd.f32 %v2755_v63, %v2754_v57 }
 0x132   : > { %v2646_v1 = vpop.f32.mrf.mxu0  ;;  %v2757_v4 = vpop.f32.mrf.mxu1 }
 0x133   : > { %v2647_v2 = vadd.f32 %v2646_v1, %v2645_v60  ;;  %v3672_v5 = vadd.f32 %v2756_v0, %v1467_v61 }
 0x134   : > { %v2648_v6 = vpop.f32.mrf.mxu0  ;;  %v2758_v8 = vpop.f32.mrf.mxu1 }
 0x135   : > { %v1470_v7 = vadd.f32 %v2647_v2, %v3593_v24  ;;  %v2759_v10 = vadd.f32 %v2758_v8, %v2757_v4 }
 0x136   : > { %v2649_v11 = vpop.f32.mrf.mxu0  ;;  %v2760_v13 = vpop.f32.mrf.mxu1 }
 0x137   : > { %v2650_v12 = vadd.f32 %v2649_v11, %v2648_v6  ;;  %v3675_v15 = vadd.f32 %v2759_v10, %v1470_v7 }
 0x138   : > { %v2651_v16 = vpop.f32.mrf.mxu0  ;;  %v2761_v19 = vpop.f32.mrf.mxu1 }
 0x139   : > { %v1475_v17 = vadd.f32 %v2650_v12, %v3593_v24  ;;  %v2762_v20 = vadd.f32 %v2761_v19, %v2760_v13 }
 0x13a   : > { %v2652_v21 = vpop.f32.mrf.mxu0  ;;  %v2763_v25 = vpop.f32.mrf.mxu1 }
 0x13b   : > { %v2653_v23 = vadd.f32 %v2652_v21, %v2651_v16  ;;  %v3678_v26 = vadd.f32 %v2762_v20, %v1475_v17 }
 0x13c   : > { %v2654_v27 = vpop.f32.mrf.mxu0  ;;  %v2764_v30 = vpop.f32.mrf.mxu1 }
 0x13d   : > { %v1478_v28 = vadd.f32 %v2653_v23, %v3593_v24  ;;  %v2765_v31 = vadd.f32 %v2764_v30, %v2763_v25 }
 0x13e   : > { %v2655_v32 = vpop.f32.mrf.mxu0  ;;  %v2766_v35 = vpop.f32.mrf.mxu1 }
 0x13f   : > { %v2656_v34 = vadd.f32 %v2655_v32, %v2654_v27  ;;  %v3681_v36 = vadd.f32 %v2765_v31, %v1478_v28 }
 0x140   : > { %v2657_v37 = vpop.f32.mrf.mxu0  ;;  %v2767_v41 = vpop.f32.mrf.mxu1 }
 0x141   : > { %v1483_v40 = vadd.f32 %v2656_v34, %v3593_v24  ;;  %v2768_v43 = vadd.f32 %v2767_v41, %v2766_v35 }
 0x142   : > { %v2658_v44 = vpop.f32.mrf.mxu0  ;;  %v2769_v46 = vpop.f32.mrf.mxu1 }
 0x143   : > { %v2659_v45 = vadd.f32 %v2658_v44, %v2657_v37  ;;  %v3684_v48 = vadd.f32 %v2768_v43, %v1483_v40 }
 0x144   : > { %v2660_v50 = vpop.f32.mrf.mxu0  ;;  %v2770_v52 = vpop.f32.mrf.mxu1 }
 0x145   : > { %v1486_v51 = vadd.f32 %v2659_v45, %v3593_v24  ;;  %v2771_v54 = vadd.f32 %v2770_v52, %v2769_v46 }
 0x146   : > { %v2661_v55 = vpop.f32.mrf.mxu0  ;;  %v2772_v57 = vpop.f32.mrf.mxu1 }
 0x147   : > { %v2662_v56 = vadd.f32 %v2661_v55, %v2660_v50  ;;  %v3687_v60 = vadd.f32 %v2771_v54, %v1486_v51 }
 0x148   : > { %v2663_v61 = vpop.f32.mrf.mxu0  ;;  %v2773_v0 = vpop.f32.mrf.mxu1 }
 0x149   : > { %v1491_v63 = vadd.f32 %v2662_v56, %v3593_v24  ;;  %v2774_v1 = vadd.f32 %v2773_v0, %v2772_v57 }
 0x14a   : > { %v2664_v2 = vpop.f32.mrf.mxu0  ;;  %v2775_v6 = vpop.f32.mrf.mxu1 }
 0x14b   : > { %v2665_v4 = vadd.f32 %v2664_v2, %v2663_v61  ;;  %v3690_v7 = vadd.f32 %v2774_v1, %v1491_v63 }
 0x14c   : > { %v2666_v8 = vpop.f32.mrf.mxu0  ;;  %v2776_v11 = vpop.f32.mrf.mxu1 }
 0x14d   : > { %v1494_v10 = vadd.f32 %v2665_v4, %v3593_v24  ;;  %v2777_v12 = vadd.f32 %v2776_v11, %v2775_v6 }
 0x14e   : > { %v2667_v13 = vpop.f32.mrf.mxu0  ;;  %v2778_v17 = vpop.f32.mrf.mxu1 }
 0x14f   : > { %v2668_v16 = vadd.f32 %v2667_v13, %v2666_v8  ;;  %v3693_v19 = vadd.f32 %v2777_v12, %v1494_v10 }
 0x150   : > { %v2669_v20 = vpop.f32.mrf.mxu0  ;;  %v2779_v23 = vpop.f32.mrf.mxu1 }
 0x151   : > { %v1499_v21 = vadd.f32 %v2668_v16, %v3593_v24  ;;  %v2780_v25 = vadd.f32 %v2779_v23, %v2778_v17 }
 0x152   : > { %v2670_v27 = vpop.f32.mrf.mxu0  ;;  %v2781_v30 = vpop.f32.mrf.mxu1 }
 0x153   : > { %v2671_v28 = vadd.f32 %v2670_v27, %v2669_v20  ;;  %v3696_v31 = vadd.f32 %v2780_v25, %v1499_v21 }
 0x154   : > { %v2672_v32 = vpop.f32.mrf.mxu0  ;;  %v2782_v35 = vpop.f32.mrf.mxu1 }
 0x155   : > { %v1502_v34 = vadd.f32 %v2671_v28, %v3593_v24  ;;  %v2783_v37 = vadd.f32 %v2782_v35, %v2781_v30 }
 0x156   : > { %v2673_v40 = vpop.f32.mrf.mxu0  ;;  %v2784_v43 = vpop.f32.mrf.mxu1 }
 0x157   : > { %v2674_v41 = vadd.f32 %v2673_v40, %v2672_v32  ;;  %v3699_v44 = vadd.f32 %v2783_v37, %v1502_v34 }
 0x158   : > { %v2675_v45 = vpop.f32.mrf.mxu0  ;;  %v2785_v50 = vpop.f32.mrf.mxu1 }
 0x159   : > { %v1507_v46 = vadd.f32 %v2674_v41, %v3593_v24  ;;  %v2786_v51 = vadd.f32 %v2785_v50, %v2784_v43 }
 0x15a   : > { %v2676_v52 = vpop.f32.mrf.mxu0  ;;  %v2787_v55 = vpop.f32.mrf.mxu1 }
 0x15b   : > { %v2677_v54 = vadd.f32 %v2676_v52, %v2675_v45  ;;  %v3702_v56 = vadd.f32 %v2786_v51, %v1507_v46 }
 0x15c   : > { %v2678_v57 = vpop.f32.mrf.mxu0  ;;  %v2788_v63 = vpop.f32.mrf.mxu1 }
 0x15d   : > { %v1510_v61 = vadd.f32 %v2677_v54, %v3593_v24  ;;  %v2789_v0 = vadd.f32 %v2788_v63, %v2787_v55 }
 0x15e   : > { %v2679_v1 = vpop.f32.mrf.mxu0  ;;  %v2790_v4 = vpop.f32.mrf.mxu1 }
 0x15f   : > { %v2680_v2 = vadd.f32 %v2679_v1, %v2678_v57  ;;  %v3705_v6 = vadd.f32 %v2789_v0, %v1510_v61 }
 0x160   : > { %v2681_v8 = vpop.f32.mrf.mxu0  ;;  %v2791_v11 = vpop.f32.mrf.mxu1 }
 0x161   : > { %v1515_v10 = vadd.f32 %v2680_v2, %v3593_v24  ;;  %v2792_v12 = vadd.f32 %v2791_v11, %v2790_v4 }
 0x162   : > { %v2682_v13 = vpop.f32.mrf.mxu0  ;;  %v2793_v17 = vpop.f32.mrf.mxu1 }
 0x163   : > { %v2683_v16 = vadd.f32 %v2682_v13, %v2681_v8  ;;  %v3708_v20 = vadd.f32 %v2792_v12, %v1515_v10 }
 0x164   : > { %v2684_v21 = vpop.f32.mrf.mxu0  ;;  %v2794_v25 = vpop.f32.mrf.mxu1 }
 0x165   : > { %v1518_v23 = vadd.f32 %v2683_v16, %v3593_v24  ;;  %v2795_v27 = vadd.f32 %v2794_v25, %v2793_v17 }
 0x166   : > { %v2685_v28 = vpop.f32.mrf.mxu0  ;;  %v2796_v32 = vpop.f32.mrf.mxu1 }
 0x167   : > { %v2686_v30 = vadd.f32 %v2685_v28, %v2684_v21  ;;  %v3711_v34 = vadd.f32 %v2795_v27, %v1518_v23 }
 0x168   : > { %v2687_v35 = vpop.f32.mrf.mxu0  ;;  %v2797_v40 = vpop.f32.mrf.mxu1 }
 0x169   : > { %v1523_v37 = vadd.f32 %v2686_v30, %v3593_v24  ;;  %v2798_v41 = vadd.f32 %v2797_v40, %v2796_v32 }
 0x16a   : > { %v2688_v43 = vpop.f32.mrf.mxu0  ;;  %v2799_v46 = vpop.f32.mrf.mxu1 }
 0x16b   : > { %v2689_v45 = vadd.f32 %v2688_v43, %v2687_v35  ;;  %v3714_v50 = vadd.f32 %v2798_v41, %v1523_v37 }
 0x16c   : > { %v2818_v51 = vpop.f32.mrf.mxu0  ;;  %v2800_v54 = vpop.f32.mrf.mxu1 }
 0x16d   : > { %v1526_v52 = vadd.f32 %v2689_v45, %v3593_v24  ;;  %v2801_v55 = vadd.f32 %v2800_v54, %v2799_v46 }
 0x16e   : > { %v2819_v57 = vpop.f32.mrf.mxu0  ;;  %v2959_v63 = vpop.f32.mrf.mxu1 }
 0x16f   : > { %v2820_v61 = vadd.f32 %v2819_v57, %v2818_v51  ;;  %v3717_v0 = vadd.f32 %v2801_v55, %v1526_v52 }
 0x170   : > { %v2821_v1 = vpop.f32.mrf.mxu0  ;;  %v1885_v4 = vpop.f32.mrf.mxu1 }
 0x171   : > { %v1725_v2 = vadd.f32 %v2820_v61, %v3601_v38 }
 0x172   : > { %v2822_v8 = vpop.f32.mrf.mxu0  ;;  %v2960_v11 = vpop.f32.mrf.mxu1 }
 0x173   : > { %v2823_v10 = vadd.f32 %v2822_v8, %v2821_v1  ;;  %v1886_v13 = vadd.f32 %v1885_v4, %v1725_v2 }
 0x174   : > { %v2824_v12 = vpop.f32.mrf.mxu0  ;;  %v1888_v17 = vpop.f32.mrf.mxu1 }
 0x175   : > { %v1728_v16 = vadd.f32 %v2823_v10, %v3607_v47  ;;  %v2012_v28 = vmax.f32 %v1886_v13, 0.0 }
 0x176   : > { %v2825_v24 = vpop.f32.mrf.mxu0  ;;  %v2963_v27 = vpop.f32.mrf.mxu1 }
 0x177   : > { %v2826_v21 = vadd.f32 %v2825_v24, %v2824_v12  ;;  %v1889_v23 = vadd.f32 %v1888_v17, %v1728_v16 }
 0x178   : > { %v2827_v25 = vpop.f32.mrf.mxu0  ;;  %v1901_v41 = vpop.f32.mrf.mxu1 }
 0x179   : > { %v1733_v30 = vadd.f32 %v2826_v21, %v3615_v58  ;;  %v2013_v32 = vmax.f32 %v1889_v23, 0.0 }
 0x17a   : > { %v2828_v35 = vpop.f32.mrf.mxu0  ;;  %v2964_v54 = vpop.f32.mrf.mxu1 }
 0x17b   : > { %v2044_v38 = vpack.c.bf16 %v2013_v32, %v2012_v28  ;;  %v2829_v37 = vadd.f32 %v2828_v35, %v2827_v25  ;;  %v1894_v43 = vadd.f32 %v2959_v63, %v1733_v30 }
 0x17c   : > { %v2830_v40 = vpop.f32.mrf.mxu0  ;;  %v1904_v8 = vpop.f32.mrf.mxu1 }
 0x17d   : > { %v1736_v45 = vadd.f32 %v2829_v37, %v3621_v3  ;;  %3005 = vmatprep.mubr.bf16.mxu1 %v2044_v38  ;;  %v2014_v55 = vmax.f32 %v1894_v43, 0.0 }
 0x17e   : > { %v2831_v47 = vpop.f32.mrf.mxu0  ;;  %v2967_v16 = vpop.f32.mrf.mxu1 }
 0x17f   : > { %v1897_v46 = vadd.f32 %v2960_v11, %v1736_v45  ;;  %v2832_v51 = vadd.f32 %v2831_v47, %v2830_v40 }
 0x180   : > { %v2833_v52 = vpop.f32.mrf.mxu0  ;;  %v1917_v30 = vpop.f32.mrf.mxu1 }
 0x181   : > { %v2015_v57 = vmax.f32 %v1897_v46, 0.0  ;;  %v1741_v61 = vadd.f32 %v2832_v51, %v3629_v14 }
 0x182   : > { %v2834_v58 = vpop.f32.mrf.mxu0 }
 0x183   : > { %v2045_v1 = vpack.c.bf16 %v2015_v57, %v2014_v55  ;;  %v2835_v2 = vadd.f32 %v2834_v58, %v2833_v52  ;;  %v1902_v10 = vadd.f32 %v1901_v41, %v1741_v61  ;;  %v2968_v41 = vpop.f32.mrf.mxu1 }
 0x184   : > { %v2836_v4 = vpop.f32.mrf.mxu0 }
 0x185   : > { %3006 = vmatmul.mubr.bf16.vlgmr.msra.gmra.mxu1 %v2045_v1  ;;  %v1744_v63 = vadd.f32 %v2835_v2, %v3632_v22  ;;  %v2016_v17 = vmax.f32 %v1902_v10, 0.0  ;;  %v1920_v55 = vpop.f32.mrf.mxu1 }
 0x186   : > { %v2837_v3 = vpop.f32.mrf.mxu0 }
 0x187   : > { %v2838_v12 = vadd.f32 %v2837_v3, %v2836_v4  ;;  %v1905_v13 = vadd.f32 %v1904_v8, %v1744_v63  ;;  %v2971_v1 = vpop.f32.mrf.mxu1 }
 0x188   : > { %v2839_v11 = vpop.f32.mrf.mxu0 }
 0x189   : > { %v1749_v24 = vadd.f32 %v2838_v12, %v3637_v33  ;;  %v2017_v21 = vmax.f32 %v1905_v13, 0.0  ;;  %v1933_v12 = vpop.f32.mrf.mxu1 }
 0x18a   : > { %v2840_v23 = vpop.f32.mrf.mxu0 }
 0x18b   : > { %v2046_v14 = vpack.c.bf16 %v2017_v21, %v2016_v17  ;;  %v2841_v25 = vadd.f32 %v2840_v23, %v2839_v11  ;;  %v1910_v32 = vadd.f32 %v2963_v27, %v1749_v24  ;;  %v2972_v23 = vpop.f32.mrf.mxu1 }
 0x18c   : > { %v2842_v28 = vpop.f32.mrf.mxu0 }
 0x18d   : > { %v1752_v35 = vadd.f32 %v2841_v25, %v3640_v42  ;;  %3009 = vmatprep.mubr.bf16.mxu1 %v2046_v14  ;;  %v2018_v43 = vmax.f32 %v1910_v32, 0.0 }
 0x18e   : > { %v2843_v38 = vpop.f32.mrf.mxu0 }
 0x18f   : > { %v1913_v22 = vadd.f32 %v2964_v54, %v1752_v35  ;;  %v2844_v37 = vadd.f32 %v2843_v38, %v2842_v28  ;;  %v1936_v38 = vpop.f32.mrf.mxu1 }
 0x190   : > { %v2845_v40 = vpop.f32.mrf.mxu0 }
 0x191   : > { %v2019_v45 = vmax.f32 %v1913_v22, 0.0  ;;  %v1757_v47 = vadd.f32 %v2844_v37, %v3645_v53 }
 0x192   : > { %v2846_v33 = vpop.f32.mrf.mxu0 }
 0x193   : > { %v2847_v46 = vadd.f32 %v2846_v33, %v2845_v40  ;;  %v2047_v51 = vpack.c.bf16 %v2019_v45, %v2018_v43  ;;  %v1918_v57 = vadd.f32 %v1917_v30, %v1757_v47  ;;  %v2975_v43 = vpop.f32.mrf.mxu1 }
 0x194   : > { %v2848_v52 = vpop.f32.mrf.mxu0 }
 0x195   : > { %3010 = vmatmul.mubr.bf16.gmra.mxu1 %v2047_v51  ;;  %v1760_v27 = vadd.f32 %v2847_v46, %v3648_v62  ;;  %v2020_v2 = vmax.f32 %v1918_v57, 0.0 }
 0x196   : > { %v2849_v42 = vpop.f32.mrf.mxu0 }
 0x197   : > { %v2850_v61 = vadd.f32 %v2849_v42, %v2848_v52  ;;  %v1921_v58 = vadd.f32 %v1920_v55, %v1760_v27  ;;  %v1949_v55 = vpop.f32.mrf.mxu1 }
 0x198   : > { %v2851_v54 = vpop.f32.mrf.mxu0 }
 0x199   : > { %v1765_v4 = vadd.f32 %v2850_v61, %v3653_v9  ;;  %v2021_v8 = vmax.f32 %v1921_v58, 0.0 }
 0x19a   : > { %v2852_v10 = vpop.f32.mrf.mxu0 }
 0x19b   : > { %v2048_v53 = vpack.c.bf16 %v2021_v8, %v2020_v2  ;;  %v2853_v63 = vadd.f32 %v2852_v10, %v2851_v54  ;;  %v1926_v13 = vadd.f32 %v2967_v16, %v1765_v4  ;;  %v2976_v54 = vpop.f32.mrf.mxu1 }
 0x19c   : > { %v2854_v3 = vpop.f32.mrf.mxu0 }
 0x19d   : > { %v1768_v11 = vadd.f32 %v2853_v63, %v3656_v18  ;;  %3013 = vmatprep.mubr.bf16.mxu1 %v2048_v53  ;;  %v2022_v14 = vmax.f32 %v1926_v13, 0.0 }
 0x19e   : > { %v2855_v17 = vpop.f32.mrf.mxu0 }
 0x19f   : > { %v1929_v62 = vadd.f32 %v2968_v41, %v1768_v11  ;;  %v2856_v24 = vadd.f32 %v2855_v17, %v2854_v3  ;;  %v1952_v3 = vpop.f32.mrf.mxu1 }
 0x1a0   : > { %v2857_v21 = vpop.f32.mrf.mxu0 }
 0x1a1   : > { %v2023_v25 = vmax.f32 %v1929_v62, 0.0  ;;  %v1773_v28 = vadd.f32 %v2856_v24, %v3660_v29  ;;  %v2979_v62 = vpop.f32.mrf.mxu1 }
 0x1a2   : > { %v2858_v9 = vpop.f32.mrf.mxu0 }
 0x1a3   : > { %v2859_v30 = vadd.f32 %v2858_v9, %v2857_v21  ;;  %v2049_v32 = vpack.c.bf16 %v2023_v25, %v2022_v14  ;;  %v1934_v22 = vadd.f32 %v1933_v12, %v1773_v28  ;;  %v1965_v9 = vpop.f32.mrf.mxu1 }
 0x1a4   : > { %v2860_v35 = vpop.f32.mrf.mxu0 }
 0x1a5   : > { %3014 = vmatmul.mubr.bf16.gmra.mxu1 %v2049_v32  ;;  %v1776_v16 = vadd.f32 %v2859_v30, %v3663_v39  ;;  %v2024_v45 = vmax.f32 %v1934_v22, 0.0 }
 0x1a6   : > { %v2861_v18 = vpop.f32.mrf.mxu0 }
 0x1a7   : > { %v2862_v37 = vadd.f32 %v2861_v18, %v2860_v35  ;;  %v1937_v40 = vadd.f32 %v1936_v38, %v1776_v16  ;;  %v2980_v16 = vpop.f32.mrf.mxu1 }
 0x1a8   : > { %v2863_v41 = vpop.f32.mrf.mxu0 }
 0x1a9   : > { %v1781_v47 = vadd.f32 %v2862_v37, %v3666_v49  ;;  %v2025_v33 = vmax.f32 %v1937_v40, 0.0 }
 0x1aa   : > { %v2864_v46 = vpop.f32.mrf.mxu0 }
 0x1ab   : > { %v2050_v29 = vpack.c.bf16 %v2025_v33, %v2024_v45  ;;  %v2865_v51 = vadd.f32 %v2864_v46, %v2863_v41  ;;  %v1942_v57 = vadd.f32 %v2971_v1, %v1781_v47  ;;  %v1968_v33 = vpop.f32.mrf.mxu1 }
 0x1ac   : > { %v2866_v52 = vpop.f32.mrf.mxu0 }
 0x1ad   : > { %v1784_v27 = vadd.f32 %v2865_v51, %v3669_v59  ;;  %3017 = vmatprep.mubr.bf16.mxu1 %v2050_v29  ;;  %v2026_v2 = vmax.f32 %v1942_v57, 0.0 }
 0x1ae   : > { %v2867_v42 = vpop.f32.mrf.mxu0 }
 0x1af   : > { %v1945_v39 = vadd.f32 %v2972_v23, %v1784_v27  ;;  %v2868_v61 = vadd.f32 %v2867_v42, %v2866_v52 }
 0x1b0   : > { %v2869_v58 = vpop.f32.mrf.mxu0 }
 0x1b1   : > { %v2027_v4 = vmax.f32 %v1945_v39, 0.0  ;;  %v1789_v8 = vadd.f32 %v2868_v61, %v3672_v5 }
 0x1b2   : > { %v2870_v49 = vpop.f32.mrf.mxu0 }
 0x1b3   : > { %v2871_v10 = vadd.f32 %v2870_v49, %v2869_v58  ;;  %v2051_v53 = vpack.c.bf16 %v2027_v4, %v2026_v2  ;;  %v1950_v12 = vadd.f32 %v1949_v55, %v1789_v8  ;;  %v2983_v55 = vpop.f32.mrf.mxu1 }
 0x1b4   : > { %v2872_v63 = vpop.f32.mrf.mxu0 }
 0x1b5   : > { %3018 = vmatmul.mubr.bf16.gmra.mxu1 %v2051_v53  ;;  %v1792_v1 = vadd.f32 %v2871_v10, %v3675_v15  ;;  %v2028_v24 = vmax.f32 %v1950_v12, 0.0 }
 0x1b6   : > { %v2873_v59 = vpop.f32.mrf.mxu0 }
 0x1b7   : > { %v2874_v13 = vadd.f32 %v2873_v59, %v2872_v63  ;;  %v1953_v11 = vadd.f32 %v1952_v3, %v1792_v1 }
 0x1b8   : > { %v2875_v17 = vpop.f32.mrf.mxu0 }
 0x1b9   : > { %v1797_v21 = vadd.f32 %v2874_v13, %v3678_v26  ;;  %v2029_v23 = vmax.f32 %v1953_v11, 0.0 }
 0x1ba   : > { %v2876_v14 = vpop.f32.mrf.mxu0 }
 0x1bb   : > { %v2052_v5 = vpack.c.bf16 %v2029_v23, %v2028_v24  ;;  %v2877_v25 = vadd.f32 %v2876_v14, %v2875_v17  ;;  %v1958_v30 = vadd.f32 %v2975_v43, %v1797_v21 }
 0x1bc   : > { %v2878_v28 = vpop.f32.mrf.mxu0 }
 0x1bd   : > { %v1800_v32 = vadd.f32 %v2877_v25, %v3681_v36  ;;  %3021 = vmatprep.mubr.bf16.mxu1 %v2052_v5  ;;  %v2030_v18 = vmax.f32 %v1958_v30, 0.0 }
 0x1be   : > { %v2879_v35 = vpop.f32.mrf.mxu0 }
 0x1bf   : > { %v1961_v15 = vadd.f32 %v2976_v54, %v1800_v32  ;;  %v2880_v38 = vadd.f32 %v2879_v35, %v2878_v28  ;;  %v1981_v54 = vpop.f32.mrf.mxu1 }
 0x1c0   : > { %v2881_v22 = vpop.f32.mrf.mxu0 }
 0x1c1   : > { %v2031_v37 = vmax.f32 %v1961_v15, 0.0  ;;  %v1805_v40 = vadd.f32 %v2880_v38, %v3684_v48  ;;  %v2984_v53 = vpop.f32.mrf.mxu1 }
 0x1c2   : > { %v2882_v26 = vpop.f32.mrf.mxu0 }
 0x1c3   : > { %v2053_v41 = vpack.c.bf16 %v2031_v37, %v2030_v18  ;;  %v2883_v45 = vadd.f32 %v2882_v26, %v2881_v22  ;;  %v1966_v46 = vadd.f32 %v1965_v9, %v1805_v40  ;;  %v1984_v11 = vpop.f32.mrf.mxu1 }
 0x1c4   : > { %v2884_v47 = vpop.f32.mrf.mxu0 }
 0x1c5   : > { %3022 = vmatmul.mubr.bf16.gmra.mxu1 %v2053_v41  ;;  %v1808_v43 = vadd.f32 %v2883_v45, %v3687_v60  ;;  %v2032_v57 = vmax.f32 %v1966_v46, 0.0  ;;  %v2987_v14 = vpop.f32.mrf.mxu1 }
 0x1c6   : > { %v2885_v36 = vpop.f32.mrf.mxu0 }
 0x1c7   : > { %v2886_v29 = vadd.f32 %v2885_v36, %v2884_v47  ;;  %v1969_v51 = vadd.f32 %v1968_v33, %v1808_v43  ;;  %v1997_v35 = vpop.f32.mrf.mxu1 }
 0x1c8   : > { %v2887_v52 = vpop.f32.mrf.mxu0 }
 0x1c9   : > { %v1813_v27 = vadd.f32 %v2886_v29, %v3690_v7  ;;  %v2033_v42 = vmax.f32 %v1969_v51, 0.0  ;;  %v2988_v37 = vpop.f32.mrf.mxu1 }
 0x1ca   : > { %v2888_v39 = vpop.f32.mrf.mxu0 }
 0x1cb   : > { %v2054_v48 = vpack.c.bf16 %v2033_v42, %v2032_v57  ;;  %v2889_v61 = vadd.f32 %v2888_v39, %v2887_v52  ;;  %v1974_v2 = vadd.f32 %v2979_v62, %v1813_v27  ;;  %v2000_v46 = vpop.f32.mrf.mxu1 }
 0x1cc   : > { %v2890_v58 = vpop.f32.mrf.mxu0 }
 0x1cd   : > { %v1816_v4 = vadd.f32 %v2889_v61, %v3693_v19  ;;  %3025 = vmatprep.mubr.bf16.mxu1 %v2054_v48  ;;  %v2034_v63 = vmax.f32 %v1974_v2, 0.0 }
 0x1ce   : > { %v2891_v8 = vpop.f32.mrf.mxu0 }
 0x1cf   : > { %v1977_v60 = vadd.f32 %v2980_v16, %v1816_v4  ;;  %v2892_v49 = vadd.f32 %v2891_v8, %v2890_v58  ;;  %v3755_v4 = vld [vmem:[%s3833_s4] ss:$0 sm:$0xff] }
 0x1d0   : > { %v2893_v10 = vpop.f32.mrf.mxu0 }
 0x1d1   : > { %v2035_v3 = vmax.f32 %v1977_v60, 0.0  ;;  %v1821_v12 = vadd.f32 %v2892_v49, %v3696_v31 }
 0x1d2   : > { %v2894_v7 = vpop.f32.mrf.mxu0 }
 0x1d3   : > { %v2055_v1 = vpack.c.bf16 %v2035_v3, %v2034_v63  ;;  %v2895_v59 = vadd.f32 %v2894_v7, %v2893_v10  ;;  %v1982_v17 = vadd.f32 %v1981_v54, %v1821_v12 }
 0x1d4   : > { %v2896_v13 = vpop.f32.mrf.mxu0 }
 0x1d5   : > { %3026 = vmatmul.mubr.bf16.gmra.mxu1 %v2055_v1  ;;  %v1824_v62 = vadd.f32 %v2895_v59, %v3699_v44  ;;  %v2036_v5 = vmax.f32 %v1982_v17, 0.0 }
 0x1d6   : > { %v2897_v19 = vpop.f32.mrf.mxu0 }
 0x1d7   : > { %v2898_v24 = vadd.f32 %v2897_v19, %v2896_v13  ;;  %v1985_v21 = vadd.f32 %v1984_v11, %v1824_v62 }
 0x1d8   : > { %v2899_v23 = vpop.f32.mrf.mxu0 }
 0x1d9   : > { %v1829_v25 = vadd.f32 %v2898_v24, %v3702_v56  ;;  %v2037_v28 = vmax.f32 %v1985_v21, 0.0 }
 0x1da   : > { %v2900_v9 = vpop.f32.mrf.mxu0 }
 0x1db   : > { %v2056_v31 = vpack.c.bf16 %v2037_v28, %v2036_v5  ;;  %v2901_v30 = vadd.f32 %v2900_v9, %v2899_v23  ;;  %v1990_v15 = vadd.f32 %v2983_v55, %v1829_v25 }
 0x1dc   : > { %v2902_v32 = vpop.f32.mrf.mxu0 }
 0x1dd   : > { %v1832_v38 = vadd.f32 %v2901_v30, %v3705_v6  ;;  %3029 = vmatprep.mubr.bf16.mxu1 %v2056_v31  ;;  %v2038_v40 = vmax.f32 %v1990_v15, 0.0 }
 0x1de   : > { %v2903_v22 = vpop.f32.mrf.mxu0 }
 0x1df   : > { %v1993_v44 = vadd.f32 %v2984_v53, %v1832_v38  ;;  %v2904_v16 = vadd.f32 %v2903_v22, %v2902_v32 }
 0x1e0   : > { %v2905_v18 = vpop.f32.mrf.mxu0 }
 0x1e1   : > { %v2039_v26 = vmax.f32 %v1993_v44, 0.0  ;;  %v1837_v41 = vadd.f32 %v2904_v16, %v3708_v20 }
 0x1e2   : > { %v2906_v56 = vpop.f32.mrf.mxu0 }
 0x1e3   : > { %v2057_v45 = vpack.c.bf16 %v2039_v26, %v2038_v40  ;;  %v2907_v47 = vadd.f32 %v2906_v56, %v2905_v18  ;;  %v1998_v43 = vadd.f32 %v1997_v35, %v1837_v41 }
 0x1e4   : > { %v2908_v33 = vpop.f32.mrf.mxu0 }
 0x1e5   : > { %3030 = vmatmul.mubr.bf16.gmra.mxu1 %v2057_v45  ;;  %v1840_v36 = vadd.f32 %v2907_v47, %v3711_v34  ;;  %v2040_v55 = vmax.f32 %v1998_v43, 0.0 }
 0x1e6   : > { %v2909_v6 = vpop.f32.mrf.mxu0 }
 0x1e7   : > { %v2910_v29 = vadd.f32 %v2909_v6, %v2908_v33  ;;  %v2001_v51 = vadd.f32 %v2000_v46, %v1840_v36 }
 0x1e8   : > { %v2911_v52 = vpop.f32.mrf.mxu0 }
 0x1e9   : > { %v1845_v57 = vadd.f32 %v2910_v29, %v3714_v50  ;;  %v2041_v27 = vmax.f32 %v2001_v51, 0.0 }
 0x1ea   : > { %v2912_v42 = vpop.f32.mrf.mxu0 }
 0x1eb   : > { %v2058_v20 = vpack.c.bf16 %v2041_v27, %v2040_v55  ;;  %v2913_v39 = vadd.f32 %v2912_v42, %v2911_v52  ;;  %v2006_v48 = vadd.f32 %v2987_v14, %v1845_v57 }
 0x1ed   : > { %v1848_v61 = vadd.f32 %v2913_v39, %v3717_v0  ;;  %3033 = vmatprep.mubr.bf16.mxu1 %v2058_v20  ;;  %v2042_v54 = vmax.f32 %v2006_v48, 0.0 }
 0x1ef   : > { %v2009_v58 = vadd.f32 %v2988_v37, %v1848_v61 }
 0x1f1   : > { %v2043_v2 = vmax.f32 %v2009_v58, 0.0 }
 0x1f3   : > { %v2059_v34 = vpack.c.bf16 %v2043_v2, %v2042_v54 }
 0x1f5   : > { %3034 = vmatmul.mubr.bf16.gmra.mxu1 %v2059_v34 }
 0x245   : > { %v3007_v50 = vpop.f32.mrf.mxu1 }
 0x246   : > { %v2174_v0 = vadd.f32 %v3007_v50, %v3755_v4 }
 0x247   : > { %v2165_v8 = vpop.f32.mrf.mxu1 }
 0x248   : > { %2294 = vst [vmem:[%s3760_s7 + $0x10] sm:$0xff] %v2174_v0  ;;  %v2166_v60 = vadd.f32 %v3755_v4, %v2165_v8 }
 0x249   : > { %v3008_v49 = vpop.f32.mrf.mxu1 }
 0x24a   : > { %2292 = vst [vmem:[%s3760_s7] sm:$0xff] %v2166_v60  ;;  %v2177_v10 = vadd.f32 %v3008_v49, %v3755_v4 }
 0x24b   : > { %v2168_v53 = vpop.f32.mrf.mxu1 }
 0x24c   : > { %2295 = vst [vmem:[%s3760_s7 + $0x18] sm:$0xff] %v2177_v10  ;;  %v2169_v63 = vadd.f32 %v3755_v4, %v2168_v53 }
 0x24e   : > { %2293 = vst [vmem:[%s3760_s7 + $0x8] sm:$0xff] %v2169_v63 }
 0x255   : > { %v3011_v3 = vpop.f32.mrf.mxu1 }
 0x256   : > { %v2190_v12 = vadd.f32 %v3011_v3, %v3755_v4 }
 0x257   : > { %v2181_v7 = vpop.f32.mrf.mxu1 }
 0x258   : > { %2298 = vst [vmem:[%s3760_s7 + $0x30] sm:$0xff] %v2190_v12  ;;  %v2182_v1 = vadd.f32 %v3755_v4, %v2181_v7 }
 0x259   : > { %v3012_v59 = vpop.f32.mrf.mxu1 }
 0x25a   : > { %2296 = vst [vmem:[%s3760_s7 + $0x20] sm:$0xff] %v2182_v1  ;;  %v2193_v13 = vadd.f32 %v3012_v59, %v3755_v4 }
 0x25b   : > { %v2184_v11 = vpop.f32.mrf.mxu1 }
 0x25c   : > { %2299 = vst [vmem:[%s3760_s7 + $0x38] sm:$0xff] %v2193_v13  ;;  %v2185_v17 = vadd.f32 %v3755_v4, %v2184_v11 }
 0x25e   : > { %2297 = vst [vmem:[%s3760_s7 + $0x28] sm:$0xff] %v2185_v17 }
 0x265   : > { %v3015_v62 = vpop.f32.mrf.mxu1 }
 0x266   : > { %v2206_v19 = vadd.f32 %v3015_v62, %v3755_v4 }
 0x267   : > { %v2197_v24 = vpop.f32.mrf.mxu1 }
 0x268   : > { %2302 = vst [vmem:[%s3760_s7 + $0x50] sm:$0xff] %v2206_v19  ;;  %v2198_v21 = vadd.f32 %v3755_v4, %v2197_v24 }
 0x269   : > { %v3016_v23 = vpop.f32.mrf.mxu1 }
 0x26a   : > { %2300 = vst [vmem:[%s3760_s7 + $0x40] sm:$0xff] %v2198_v21  ;;  %v2209_v14 = vadd.f32 %v3016_v23, %v3755_v4 }
 0x26b   : > { %v2200_v5 = vpop.f32.mrf.mxu1 }
 0x26c   : > { %2303 = vst [vmem:[%s3760_s7 + $0x58] sm:$0xff] %v2209_v14  ;;  %v2201_v25 = vadd.f32 %v3755_v4, %v2200_v5 }
 0x26e   : > { %2301 = vst [vmem:[%s3760_s7 + $0x48] sm:$0xff] %v2201_v25 }
 0x275   : > { %v3019_v28 = vpop.f32.mrf.mxu1 }
 0x276   : > { %v2222_v9 = vadd.f32 %v3019_v28, %v3755_v4 }
 0x277   : > { %v2213_v31 = vpop.f32.mrf.mxu1 }
 0x278   : > { %2306 = vst [vmem:[%s3760_s7 + $0x70] sm:$0xff] %v2222_v9  ;;  %v2214_v30 = vadd.f32 %v3755_v4, %v2213_v31 }
 0x279   : > { %v3020_v32 = vpop.f32.mrf.mxu1 }
 0x27a   : > { %2304 = vst [vmem:[%s3760_s7 + $0x60] sm:$0xff] %v2214_v30  ;;  %v2225_v35 = vadd.f32 %v3020_v32, %v3755_v4 }
 0x27b   : > { %v2216_v15 = vpop.f32.mrf.mxu1 }
 0x27c   : > { %2307 = vst [vmem:[%s3760_s7 + $0x78] sm:$0xff] %v2225_v35  ;;  %v2217_v38 = vadd.f32 %v3755_v4, %v2216_v15 }
 0x27e   : > { %2305 = vst [vmem:[%s3760_s7 + $0x68] sm:$0xff] %v2217_v38 }
 0x285   : > { %v3023_v22 = vpop.f32.mrf.mxu1 }
 0x286   : > { %v2238_v44 = vadd.f32 %v3023_v22, %v3755_v4 }
 0x287   : > { %v2229_v16 = vpop.f32.mrf.mxu1 }
 0x288   : > { %2310 = vst [vmem:[%s3760_s7 + $0x90] sm:$0xff] %v2238_v44  ;;  %v2230_v18 = vadd.f32 %v3755_v4, %v2229_v16 }
 0x289   : > { %v3024_v37 = vpop.f32.mrf.mxu1 }
 0x28a   : > { %2308 = vst [vmem:[%s3760_s7 + $0x80] sm:$0xff] %v2230_v18  ;;  %v2241_v40 = vadd.f32 %v3024_v37, %v3755_v4 }
 0x28b   : > { %v2232_v26 = vpop.f32.mrf.mxu1 }
 0x28c   : > { %2311 = vst [vmem:[%s3760_s7 + $0x98] sm:$0xff] %v2241_v40  ;;  %v2233_v41 = vadd.f32 %v3755_v4, %v2232_v26 }
 0x28e   : > { %2309 = vst [vmem:[%s3760_s7 + $0x88] sm:$0xff] %v2233_v41 }
 0x295   : > { %v3027_v56 = vpop.f32.mrf.mxu1 }
 0x296   : > { %v2254_v45 = vadd.f32 %v3027_v56, %v3755_v4 }
 0x297   : > { %v2245_v47 = vpop.f32.mrf.mxu1 }
 0x298   : > { %2314 = vst [vmem:[%s3760_s7 + $0xb0] sm:$0xff] %v2254_v45  ;;  %v2246_v33 = vadd.f32 %v3755_v4, %v2245_v47 }
 0x299   : > { %v3028_v46 = vpop.f32.mrf.mxu1 }
 0x29a   : > { %2312 = vst [vmem:[%s3760_s7 + $0xa0] sm:$0xff] %v2246_v33  ;;  %v2257_v43 = vadd.f32 %v3028_v46, %v3755_v4 }
 0x29b   : > { %v2248_v36 = vpop.f32.mrf.mxu1 }
 0x29c   : > { %2315 = vst [vmem:[%s3760_s7 + $0xb8] sm:$0xff] %v2257_v43  ;;  %v2249_v6 = vadd.f32 %v3755_v4, %v2248_v36 }
 0x29e   : > { %2313 = vst [vmem:[%s3760_s7 + $0xa8] sm:$0xff] %v2249_v6 }
 0x2a5   : > { %v3031_v29 = vpop.f32.mrf.mxu1 }
 0x2a6   : > { %v2270_v51 = vadd.f32 %v3031_v29, %v3755_v4 }
 0x2a7   : > { %v2261_v52 = vpop.f32.mrf.mxu1 }
 0x2a8   : > { %2318 = vst [vmem:[%s3760_s7 + $0xd0] sm:$0xff] %v2270_v51  ;;  %v2262_v55 = vadd.f32 %v3755_v4, %v2261_v52 }
 0x2a9   : > { %v3032_v57 = vpop.f32.mrf.mxu1 }
 0x2aa   : > { %2316 = vst [vmem:[%s3760_s7 + $0xc0] sm:$0xff] %v2262_v55  ;;  %v2273_v27 = vadd.f32 %v3032_v57, %v3755_v4 }
 0x2ab   : > { %v2264_v42 = vpop.f32.mrf.mxu1 }
 0x2ac   : > { %2319 = vst [vmem:[%s3760_s7 + $0xd8] sm:$0xff] %v2273_v27  ;;  %v2265_v20 = vadd.f32 %v3755_v4, %v2264_v42 }
 0x2ae   : > { %2317 = vst [vmem:[%s3760_s7 + $0xc8] sm:$0xff] %v2265_v20 }
 0x2b5   : > { %v3035_v39 = vpop.f32.mrf.mxu1 }
 0x2b6   : > { %v2286_v48 = vadd.f32 %v3035_v39, %v3755_v4 }
 0x2b7   : > { %v2277_v61 = vpop.f32.mrf.mxu1 }
 0x2b8   : > { %2322 = vst [vmem:[%s3760_s7 + $0xf0] sm:$0xff] %v2286_v48  ;;  %v2278_v58 = vadd.f32 %v3755_v4, %v2277_v61 }
 0x2b9   : > { %v3036_v54 = vpop.f32.mrf.mxu1 }
 0x2ba   : > { %2320 = vst [vmem:[%s3760_s7 + $0xe0] sm:$0xff] %v2278_v58  ;;  %v2289_v2 = vadd.f32 %v3036_v54, %v3755_v4 }
 0x2bb   : > { %v2280_v34 = vpop.f32.mrf.mxu1 }
 0x2bc   : > { %2323 = vst [vmem:[%s3760_s7 + $0xf8] sm:$0xff] %v2289_v2  ;;  %v2281_v50 = vadd.f32 %v3755_v4, %v2280_v34 }
 0x2be   : > { %2321 = vst [vmem:[%s3760_s7 + $0xe8] sm:$0xff] %v2281_v50 }
 0x2bf PF: > { %s15_s18 = sadd.s32 1, %s3269_s18  }
 0x2c0   : > { %p12_p4 = scmp.ge.s32.totalorder %s15_s18, 4  }
 0x2c2   :  { %14 = sbr.rel (!%p12_p4) target bundleno = 1 (0x1), region = 70 }

</bundles_post_ra>
